<compile_context>
chip_gen: v6e
topology: v6e:2x2x1
jax: 0.10.0
libtpu: 0.0.40
codegen_flags: <defaults>
</compile_context>

<pallas_src>
import numpy as np
import jax
import jax.numpy as jnp
from jax.experimental import pallas as pl
from jax.experimental.pallas import tpu as pltpu

_C1, _C2 = 6, 16     # conv output channels
_P2 = 4              # spatial size after pool2
_BT_MAX = 32         # batch rows per grid step when the batch is gridded


# ------------------------------ Pallas kernel -------------------------------

def _classifier_kernel(x_ref, w1_ref, w2_ref, wf1_ref, wf2_ref, wf3_ref, b_ref,
                       o_ref):
    f32 = jnp.float32
    bt = x_ref.shape[0]
    x = x_ref[...]                                       # (bt, 28, 84) lanes=(w_in,c_in)

    # conv1: 5 tap matmuls, K = 84 = (w_in, c_in), N = 256.
    # Even w_out -> lanes [wp*6 + c], odd w_out -> lanes [128 + wp*6 + c].
    acc = jnp.zeros((bt * 24, 256), f32)
    for i in range(5):
        xi = x[:, i:i + 24, :].reshape(bt * 24, 84)
        acc = acc + jnp.dot(xi, w1_ref[i], preferred_element_type=f32)
    y = jnp.maximum(acc + b_ref[0:1, :], 0.0)            # bias + relu

    # pool1: h via parity reshape+max, w via aligned even/odd half max.
    z = y.reshape(bt * 12, 2, 256)
    z = jnp.maximum(z[:, 0, :], z[:, 1, :])              # (bt*12, 256)
    p1 = jnp.maximum(z[:, :128], z[:, 128:]).reshape(bt, 12, 128)

    # conv2: 5 tap matmuls, K = 128 (lanes wp*6 + c1 of pool1), N = 256
    # (even/odd w2 halves, 16 channels each).
    acc = jnp.zeros((bt * 8, 256), f32)
    for i in range(5):
        xi = p1[:, i:i + 8, :].reshape(bt * 8, 128)
        acc = acc + jnp.dot(xi, w2_ref[i], preferred_element_type=f32)
    y = jnp.maximum(acc + b_ref[1:2, :], 0.0)

    # pool2
    z = y.reshape(bt * 4, 2, 256)
    z = jnp.maximum(z[:, 0, :], z[:, 1, :])              # (bt*4, 256)
    p2 = jnp.maximum(z[:, :128], z[:, 128:]).reshape(bt, 4, 128)

    # fc1: 4 K=128 matmuls (one per pooled row); stride-2 selection and the
    # PyTorch NCHW flatten order are folded into wf1_ref.
    acc = jnp.zeros((bt, 128), f32)
    for h in range(_P2):
        acc = acc + jnp.dot(p2[:, h, :], wf1_ref[h], preferred_element_type=f32)
    z = jnp.maximum(acc + b_ref[2:3, :128], 0.0)

    # fc2 (128 -> 64) + relu ; fc3 (64 -> 10, zero-padded to 128 lanes).
    z = jnp.maximum(jnp.dot(z, wf2_ref[...], preferred_element_type=f32)
                    + b_ref[3:4, :64], 0.0)
    z = jnp.dot(z, wf3_ref[...], preferred_element_type=f32) + b_ref[4:5, :128]
    o_ref[...] = z.astype(o_ref.dtype)


# ------------------------- weight packing / wrapper --------------------------

def init_params(key):
    """PyTorch-layout params with uniform(-1/sqrt(fan_in), 1/sqrt(fan_in)) init."""
    def uni(k, shape, fan_in):
        bound = 1.0 / float(fan_in) ** 0.5
        return jax.random.uniform(k, shape, jnp.float32, -bound, bound)

    ks = jax.random.split(key, 10)
    return {
        "w1": uni(ks[0], (_C1, 3, 5, 5), 3 * 5 * 5),
        "b1": uni(ks[1], (_C1,), 3 * 5 * 5),
        "w2": uni(ks[2], (_C2, _C1, 5, 5), _C1 * 5 * 5),
        "b2": uni(ks[3], (_C2,), _C1 * 5 * 5),
        "wf1": uni(ks[4], (128, _C2 * _P2 * _P2), _C2 * _P2 * _P2),
        "bf1": uni(ks[5], (128,), _C2 * _P2 * _P2),
        "wf2": uni(ks[6], (64, 128), 128),
        "bf2": uni(ks[7], (64,), 128),
        "wf3": uni(ks[8], (10, 64), 64),
        "bf3": uni(ks[9], (10,), 64),
    }


def pack_params(p):
    """One-time host-side repack of PyTorch-layout params into the lane-dense
    matrices consumed by the fused kernel (conv taps / pool selection / flatten
    order all folded into the weights)."""
    w1 = np.asarray(p["w1"], np.float32)     # (6, 3, 5, 5)
    w2 = np.asarray(p["w2"], np.float32)     # (16, 6, 5, 5)
    wf1 = np.asarray(p["wf1"], np.float32)   # (128, 256)
    wf2 = np.asarray(p["wf2"], np.float32)   # (64, 128)
    wf3 = np.asarray(p["wf3"], np.float32)   # (10, 64)

    # conv1: tap i matrix (84, 256).  K index = w_in*3 + c_in.
    # N index: even w_out=2*wp -> wp*6 + c_out ; odd w_out=2*wp+1 -> 128 + wp*6 + c_out.
    W1 = np.zeros((5, 84, 256), np.float32)
    for i in range(5):
        for j in range(5):
            wt = w1[:, :, i, j].T                        # (c_in, c_out)
            for wo in range(24):
                k0 = (wo + j) * 3
                n0 = (wo // 2) * _C1 + 128 * (wo % 2)
                W1[i, k0:k0 + 3, n0:n0 + _C1] = wt

    # conv2: tap i matrix (128, 256).  K index = wp*6 + c1 (pool1 layout);
    # N index: even w2 -> wq*16 + c2 ; odd w2 -> 128 + wq*16 + c2.
    W2 = np.zeros((5, 128, 256), np.float32)
    for i in range(5):
        for j in range(5):
            wt = w2[:, :, i, j].T                        # (c1, c2)
            for wo in range(8):
                k0 = (wo + j) * _C1
                n0 = (wo // 2) * _C2 + 128 * (wo % 2)
                W2[i, k0:k0 + _C1, n0:n0 + _C2] = wt

    # fc1: per-pooled-row matrix (128, 128).  K index = w*16 + c2 (pool2 layout);
    # PyTorch flatten index = c2*16 + h*4 + w.
    WF1 = np.zeros((_P2, 128, 128), np.float32)
    wf1r = wf1.reshape(128, _C2, _P2, _P2)               # (o, c2, h, w)
    for h in range(_P2):
        for w in range(_P2):
            WF1[h, w * _C2:(w + 1) * _C2, :] = wf1r[:, :, h, w].T

    WF2 = np.ascontiguousarray(wf2.T)                    # (128, 64)
    WF3 = np.zeros((64, 128), np.float32)
    WF3[:, :10] = wf3.T

    bias = np.zeros((8, 256), np.float32)
    t1 = np.tile(np.asarray(p["b1"], np.float32), 12)    # 72 lanes per half
    bias[0, :72] = t1
    bias[0, 128:200] = t1
    t2 = np.tile(np.asarray(p["b2"], np.float32), 4)     # 64 lanes per half
    bias[1, :64] = t2
    bias[1, 128:192] = t2
    bias[2, :128] = np.asarray(p["bf1"], np.float32)
    bias[3, :64] = np.asarray(p["bf2"], np.float32)
    bias[4, :10] = np.asarray(p["bf3"], np.float32)

    return {"w1": jnp.asarray(W1), "w2": jnp.asarray(W2), "wf1": jnp.asarray(WF1),
            "wf2": jnp.asarray(WF2), "wf3": jnp.asarray(WF3),
            "bias": jnp.asarray(bias)}


def classifier_forward(packed, x_nchw):
    """Forward pass matching the PyTorch Classifier.forward semantics."""
    n = x_nchw.shape[0]
    # Boundary glue only: NCHW -> (n, 28, 28*3) so lanes are (w_in, c_in).
    x = jnp.transpose(x_nchw, (0, 2, 3, 1)).astype(jnp.float32).reshape(n, 28, 84)
    if n <= _BT_MAX:
        bt, npad = n, n
    else:
        bt = _BT_MAX
        npad = ((n + bt - 1) // bt) * bt
        x = jnp.pad(x, ((0, npad - n), (0, 0), (0, 0)))

    logits = pl.pallas_call(
        _classifier_kernel,
        out_shape=jax.ShapeDtypeStruct((npad, 128), jnp.float32),
        grid_spec=pltpu.PrefetchScalarGridSpec(
            num_scalar_prefetch=0,
            grid=(npad // bt,),
            in_specs=[
                pl.BlockSpec((bt, 28, 84), lambda b: (b, 0, 0)),
                pl.BlockSpec((5, 84, 256), lambda b: (0, 0, 0)),
                pl.BlockSpec((5, 128, 256), lambda b: (0, 0, 0)),
                pl.BlockSpec((_P2, 128, 128), lambda b: (0, 0, 0)),
                pl.BlockSpec((128, 64), lambda b: (0, 0)),
                pl.BlockSpec((64, 128), lambda b: (0, 0)),
                pl.BlockSpec((8, 256), lambda b: (0, 0)),
            ],
            out_specs=pl.BlockSpec((bt, 128), lambda b: (b, 0)),
        ),
        compiler_params=pltpu.CompilerParams(
            dimension_semantics=("parallel",),
            vmem_limit_bytes=48 * 1024 * 1024,
        ),
    )(x, packed["w1"], packed["w2"], packed["wf1"], packed["wf2"],
      packed["wf3"], packed["bias"])
    return logits[:n, :10]


# ------------------------------ pure-JAX reference ---------------------------

def classifier_reference(params, x_nchw):
    def pool(t):
        return jax.lax.reduce_window(t, -jnp.inf, jax.lax.max,
                                     (1, 1, 2, 2), (1, 1, 2, 2), "VALID")

    x = jax.lax.conv_general_dilated(
        x_nchw, params["w1"], (1, 1), "VALID",
        dimension_numbers=("NCHW", "OIHW", "NCHW"))
    x = pool(jax.nn.relu(x + params["b1"][None, :, None, None]))
    x = jax.lax.conv_general_dilated(
        x, params["w2"], (1, 1), "VALID",
        dimension_numbers=("NCHW", "OIHW", "NCHW"))
    x = pool(jax.nn.relu(x + params["b2"][None, :, None, None]))
    x = x.reshape(x.shape[0], -1)                        # NCHW flatten: (c, h, w)
    x = jax.nn.relu(x @ params["wf1"].T + params["bf1"])
    x = jax.nn.relu(x @ params["wf2"].T + params["bf2"])
    return x @ params["wf3"].T + params["bf3"]


if __name__ == "__main__":
    key = jax.random.PRNGKey(0)
    pkey, xkey, x2key = jax.random.split(key, 3)
    params = init_params(pkey)
    packed = pack_params(params)          # one-time lane-dense weight packing
    fwd = jax.jit(classifier_forward)

    # Input is NCHW like PyTorch; 28x28 is required by fc1 = Linear(16*4*4, 128).
    x = jax.random.normal(xkey, (2, 3, 28, 28), jnp.float32)
    out = jax.block_until_ready(fwd(packed, x))
    assert out.shape == (2, 10), out.shape
    assert out.dtype == jnp.float32
    assert bool(jnp.all(jnp.isfinite(out)))
    ref = jax.block_until_ready(jax.jit(classifier_reference)(params, x))
    assert jnp.allclose(out, ref, rtol=2e-3, atol=2e-3), \
        float(jnp.max(jnp.abs(out - ref)))

    # Also exercise the gridded path (bt=32, 2 grid steps, padded batch rows).
    x2 = jax.random.normal(x2key, (40, 3, 28, 28), jnp.float32)
    out2 = jax.block_until_ready(fwd(packed, x2))
    ref2 = jax.block_until_ready(jax.jit(classifier_reference)(params, x2))
    assert out2.shape == (40, 10), out2.shape
    assert jnp.allclose(out2, ref2, rtol=2e-3, atol=2e-3), \
        float(jnp.max(jnp.abs(out2 - ref2)))

    print("KERNEL_OK")
</pallas_src>

<mosaic_0001>
module attributes {stable_mosaic.version = 11 : i64} {
  func.func @_classifier_kernel(%arg0: i32, %arg1: memref<2x28x84xf32, #tpu.memory_space<vmem>>, %arg2: memref<5x84x256xf32, #tpu.memory_space<vmem>>, %arg3: memref<5x128x256xf32, #tpu.memory_space<vmem>>, %arg4: memref<4x128x128xf32, #tpu.memory_space<vmem>>, %arg5: memref<128x64xf32, #tpu.memory_space<vmem>>, %arg6: memref<64x128xf32, #tpu.memory_space<vmem>>, %arg7: memref<8x256xf32, #tpu.memory_space<vmem>>, %arg8: memref<2x128xf32, #tpu.memory_space<vmem>>) attributes {dimension_semantics = [#tpu.dimension_semantics<parallel>], iteration_bounds = array<i64: 1>, scalar_prefetch = 0 : i64, scratch_operands = 0 : i64, tpu.core_type = #tpu.core_type<tc>, window_params = [{transform_indices = @transform_0, window_bounds = array<i64: 2, 28, 84>}, {pipeline_mode = #tpu.pipeline_mode<synchronous>, transform_indices = @transform_1, window_bounds = array<i64: 5, 84, 256>}, {pipeline_mode = #tpu.pipeline_mode<synchronous>, transform_indices = @transform_2, window_bounds = array<i64: 5, 128, 256>}, {pipeline_mode = #tpu.pipeline_mode<synchronous>, transform_indices = @transform_3, window_bounds = array<i64: 4, 128, 128>}, {pipeline_mode = #tpu.pipeline_mode<synchronous>, transform_indices = @transform_4, window_bounds = array<i64: 128, 64>}, {pipeline_mode = #tpu.pipeline_mode<synchronous>, transform_indices = @transform_5, window_bounds = array<i64: 64, 128>}, {pipeline_mode = #tpu.pipeline_mode<synchronous>, transform_indices = @transform_6, window_bounds = array<i64: 8, 256>}, {transform_indices = @transform_7, window_bounds = array<i64: 2, 128>}]} {
    %c0 = arith.constant 0 : index
    %c0_0 = arith.constant 0 : index
    %c0_1 = arith.constant 0 : index
    %0 = vector.load %arg1[%c0, %c0_0, %c0_1] : memref<2x28x84xf32, #tpu.memory_space<vmem>>, vector<2x28x84xf32>
    %cst = arith.constant 0.000000e+00 : f32
    %1 = vector.broadcast %cst : f32 to vector<48x256xf32>
    %2 = vector.extract_strided_slice %0 {offsets = [0, 0, 0], sizes = [2, 24, 84], strides = [1, 1, 1]} : vector<2x28x84xf32> to vector<2x24x84xf32>
    %3 = vector.shape_cast %2 : vector<2x24x84xf32> to vector<48x84xf32>
    %c0_2 = arith.constant 0 : index
    %c0_3 = arith.constant 0 : index
    %c0_4 = arith.constant 0 : index
    %4 = vector.load %arg2[%c0_2, %c0_3, %c0_4] : memref<5x84x256xf32, #tpu.memory_space<vmem>>, vector<1x84x256xf32>
    %5 = vector.shape_cast %4 : vector<1x84x256xf32> to vector<84x256xf32>
    %cst_5 = arith.constant dense<0.000000e+00> : vector<48x256xf32>
    %6 = tpu.matmul %3, %5, %cst_5 {dimension_numbers = #tpu.dot_dimension_numbers<[1], [0], [0], [1], [0, 0, 1, 1], [], []>} : vector<48x84xf32>, vector<84x256xf32>, vector<48x256xf32> -> vector<48x256xf32>
    %7 = arith.addf %1, %6 : vector<48x256xf32>
    %8 = vector.extract_strided_slice %0 {offsets = [0, 1, 0], sizes = [2, 24, 84], strides = [1, 1, 1]} : vector<2x28x84xf32> to vector<2x24x84xf32>
    %9 = vector.shape_cast %8 : vector<2x24x84xf32> to vector<48x84xf32>
    %c1 = arith.constant 1 : index
    %c0_6 = arith.constant 0 : index
    %c0_7 = arith.constant 0 : index
    %10 = vector.load %arg2[%c1, %c0_6, %c0_7] : memref<5x84x256xf32, #tpu.memory_space<vmem>>, vector<1x84x256xf32>
    %11 = vector.shape_cast %10 : vector<1x84x256xf32> to vector<84x256xf32>
    %cst_8 = arith.constant dense<0.000000e+00> : vector<48x256xf32>
    %12 = tpu.matmul %9, %11, %cst_8 {dimension_numbers = #tpu.dot_dimension_numbers<[1], [0], [0], [1], [0, 0, 1, 1], [], []>} : vector<48x84xf32>, vector<84x256xf32>, vector<48x256xf32> -> vector<48x256xf32>
    %13 = arith.addf %7, %12 : vector<48x256xf32>
    %14 = vector.extract_strided_slice %0 {offsets = [0, 2, 0], sizes = [2, 24, 84], strides = [1, 1, 1]} : vector<2x28x84xf32> to vector<2x24x84xf32>
    %15 = vector.shape_cast %14 : vector<2x24x84xf32> to vector<48x84xf32>
    %c2 = arith.constant 2 : index
    %c0_9 = arith.constant 0 : index
    %c0_10 = arith.constant 0 : index
    %16 = vector.load %arg2[%c2, %c0_9, %c0_10] : memref<5x84x256xf32, #tpu.memory_space<vmem>>, vector<1x84x256xf32>
    %17 = vector.shape_cast %16 : vector<1x84x256xf32> to vector<84x256xf32>
    %cst_11 = arith.constant dense<0.000000e+00> : vector<48x256xf32>
    %18 = tpu.matmul %15, %17, %cst_11 {dimension_numbers = #tpu.dot_dimension_numbers<[1], [0], [0], [1], [0, 0, 1, 1], [], []>} : vector<48x84xf32>, vector<84x256xf32>, vector<48x256xf32> -> vector<48x256xf32>
    %19 = arith.addf %13, %18 : vector<48x256xf32>
    %20 = vector.extract_strided_slice %0 {offsets = [0, 3, 0], sizes = [2, 24, 84], strides = [1, 1, 1]} : vector<2x28x84xf32> to vector<2x24x84xf32>
    %21 = vector.shape_cast %20 : vector<2x24x84xf32> to vector<48x84xf32>
    %c3 = arith.constant 3 : index
    %c0_12 = arith.constant 0 : index
    %c0_13 = arith.constant 0 : index
    %22 = vector.load %arg2[%c3, %c0_12, %c0_13] : memref<5x84x256xf32, #tpu.memory_space<vmem>>, vector<1x84x256xf32>
    %23 = vector.shape_cast %22 : vector<1x84x256xf32> to vector<84x256xf32>
    %cst_14 = arith.constant dense<0.000000e+00> : vector<48x256xf32>
    %24 = tpu.matmul %21, %23, %cst_14 {dimension_numbers = #tpu.dot_dimension_numbers<[1], [0], [0], [1], [0, 0, 1, 1], [], []>} : vector<48x84xf32>, vector<84x256xf32>, vector<48x256xf32> -> vector<48x256xf32>
    %25 = arith.addf %19, %24 : vector<48x256xf32>
    %26 = vector.extract_strided_slice %0 {offsets = [0, 4, 0], sizes = [2, 24, 84], strides = [1, 1, 1]} : vector<2x28x84xf32> to vector<2x24x84xf32>
    %27 = vector.shape_cast %26 : vector<2x24x84xf32> to vector<48x84xf32>
    %c4 = arith.constant 4 : index
    %c0_15 = arith.constant 0 : index
    %c0_16 = arith.constant 0 : index
    %28 = vector.load %arg2[%c4, %c0_15, %c0_16] : memref<5x84x256xf32, #tpu.memory_space<vmem>>, vector<1x84x256xf32>
    %29 = vector.shape_cast %28 : vector<1x84x256xf32> to vector<84x256xf32>
    %cst_17 = arith.constant dense<0.000000e+00> : vector<48x256xf32>
    %30 = tpu.matmul %27, %29, %cst_17 {dimension_numbers = #tpu.dot_dimension_numbers<[1], [0], [0], [1], [0, 0, 1, 1], [], []>} : vector<48x84xf32>, vector<84x256xf32>, vector<48x256xf32> -> vector<48x256xf32>
    %31 = arith.addf %25, %30 : vector<48x256xf32>
    %c0_18 = arith.constant 0 : index
    %c0_19 = arith.constant 0 : index
    %32 = vector.load %arg7[%c0_18, %c0_19] : memref<8x256xf32, #tpu.memory_space<vmem>>, vector<1x256xf32>
    %33 = vector.broadcast %32 : vector<1x256xf32> to vector<48x256xf32>
    %34 = arith.addf %31, %33 : vector<48x256xf32>
    %cst_20 = arith.constant 0.000000e+00 : f32
    %35 = vector.broadcast %cst_20 : f32 to vector<48x256xf32>
    %36 = arith.maximumf %34, %35 : vector<48x256xf32>
    %37 = vector.shape_cast %36 : vector<48x256xf32> to vector<24x2x256xf32>
    %38 = vector.extract_strided_slice %37 {offsets = [0, 0, 0], sizes = [24, 1, 256], strides = [1, 1, 1]} : vector<24x2x256xf32> to vector<24x1x256xf32>
    %39 = vector.shape_cast %38 : vector<24x1x256xf32> to vector<24x256xf32>
    %40 = vector.extract_strided_slice %37 {offsets = [0, 1, 0], sizes = [24, 1, 256], strides = [1, 1, 1]} : vector<24x2x256xf32> to vector<24x1x256xf32>
    %41 = vector.shape_cast %40 : vector<24x1x256xf32> to vector<24x256xf32>
    %42 = arith.maximumf %39, %41 : vector<24x256xf32>
    %43 = vector.extract_strided_slice %42 {offsets = [0, 0], sizes = [24, 128], strides = [1, 1]} : vector<24x256xf32> to vector<24x128xf32>
    %44 = vector.extract_strided_slice %42 {offsets = [0, 128], sizes = [24, 128], strides = [1, 1]} : vector<24x256xf32> to vector<24x128xf32>
    %45 = arith.maximumf %43, %44 : vector<24x128xf32>
    %46 = vector.shape_cast %45 : vector<24x128xf32> to vector<2x12x128xf32>
    %cst_21 = arith.constant 0.000000e+00 : f32
    %47 = vector.broadcast %cst_21 : f32 to vector<16x256xf32>
    %48 = vector.extract_strided_slice %46 {offsets = [0, 0, 0], sizes = [2, 8, 128], strides = [1, 1, 1]} : vector<2x12x128xf32> to vector<2x8x128xf32>
    %49 = vector.shape_cast %48 : vector<2x8x128xf32> to vector<16x128xf32>
    %c0_22 = arith.constant 0 : index
    %c0_23 = arith.constant 0 : index
    %c0_24 = arith.constant 0 : index
    %50 = vector.load %arg3[%c0_22, %c0_23, %c0_24] : memref<5x128x256xf32, #tpu.memory_space<vmem>>, vector<1x128x256xf32>
    %51 = vector.shape_cast %50 : vector<1x128x256xf32> to vector<128x256xf32>
    %cst_25 = arith.constant dense<0.000000e+00> : vector<16x256xf32>
    %52 = tpu.matmul %49, %51, %cst_25 {dimension_numbers = #tpu.dot_dimension_numbers<[1], [0], [0], [1], [0, 0, 1, 1], [], []>} : vector<16x128xf32>, vector<128x256xf32>, vector<16x256xf32> -> vector<16x256xf32>
    %53 = arith.addf %47, %52 : vector<16x256xf32>
    %54 = vector.extract_strided_slice %46 {offsets = [0, 1, 0], sizes = [2, 8, 128], strides = [1, 1, 1]} : vector<2x12x128xf32> to vector<2x8x128xf32>
    %55 = vector.shape_cast %54 : vector<2x8x128xf32> to vector<16x128xf32>
    %c1_26 = arith.constant 1 : index
    %c0_27 = arith.constant 0 : index
    %c0_28 = arith.constant 0 : index
    %56 = vector.load %arg3[%c1_26, %c0_27, %c0_28] : memref<5x128x256xf32, #tpu.memory_space<vmem>>, vector<1x128x256xf32>
    %57 = vector.shape_cast %56 : vector<1x128x256xf32> to vector<128x256xf32>
    %cst_29 = arith.constant dense<0.000000e+00> : vector<16x256xf32>
    %58 = tpu.matmul %55, %57, %cst_29 {dimension_numbers = #tpu.dot_dimension_numbers<[1], [0], [0], [1], [0, 0, 1, 1], [], []>} : vector<16x128xf32>, vector<128x256xf32>, vector<16x256xf32> -> vector<16x256xf32>
    %59 = arith.addf %53, %58 : vector<16x256xf32>
    %60 = vector.extract_strided_slice %46 {offsets = [0, 2, 0], sizes = [2, 8, 128], strides = [1, 1, 1]} : vector<2x12x128xf32> to vector<2x8x128xf32>
    %61 = vector.shape_cast %60 : vector<2x8x128xf32> to vector<16x128xf32>
    %c2_30 = arith.constant 2 : index
    %c0_31 = arith.constant 0 : index
    %c0_32 = arith.constant 0 : index
    %62 = vector.load %arg3[%c2_30, %c0_31, %c0_32] : memref<5x128x256xf32, #tpu.memory_space<vmem>>, vector<1x128x256xf32>
    %63 = vector.shape_cast %62 : vector<1x128x256xf32> to vector<128x256xf32>
    %cst_33 = arith.constant dense<0.000000e+00> : vector<16x256xf32>
    %64 = tpu.matmul %61, %63, %cst_33 {dimension_numbers = #tpu.dot_dimension_numbers<[1], [0], [0], [1], [0, 0, 1, 1], [], []>} : vector<16x128xf32>, vector<128x256xf32>, vector<16x256xf32> -> vector<16x256xf32>
    %65 = arith.addf %59, %64 : vector<16x256xf32>
    %66 = vector.extract_strided_slice %46 {offsets = [0, 3, 0], sizes = [2, 8, 128], strides = [1, 1, 1]} : vector<2x12x128xf32> to vector<2x8x128xf32>
    %67 = vector.shape_cast %66 : vector<2x8x128xf32> to vector<16x128xf32>
    %c3_34 = arith.constant 3 : index
    %c0_35 = arith.constant 0 : index
    %c0_36 = arith.constant 0 : index
    %68 = vector.load %arg3[%c3_34, %c0_35, %c0_36] : memref<5x128x256xf32, #tpu.memory_space<vmem>>, vector<1x128x256xf32>
    %69 = vector.shape_cast %68 : vector<1x128x256xf32> to vector<128x256xf32>
    %cst_37 = arith.constant dense<0.000000e+00> : vector<16x256xf32>
    %70 = tpu.matmul %67, %69, %cst_37 {dimension_numbers = #tpu.dot_dimension_numbers<[1], [0], [0], [1], [0, 0, 1, 1], [], []>} : vector<16x128xf32>, vector<128x256xf32>, vector<16x256xf32> -> vector<16x256xf32>
    %71 = arith.addf %65, %70 : vector<16x256xf32>
    %72 = vector.extract_strided_slice %46 {offsets = [0, 4, 0], sizes = [2, 8, 128], strides = [1, 1, 1]} : vector<2x12x128xf32> to vector<2x8x128xf32>
    %73 = vector.shape_cast %72 : vector<2x8x128xf32> to vector<16x128xf32>
    %c4_38 = arith.constant 4 : index
    %c0_39 = arith.constant 0 : index
    %c0_40 = arith.constant 0 : index
    %74 = vector.load %arg3[%c4_38, %c0_39, %c0_40] : memref<5x128x256xf32, #tpu.memory_space<vmem>>, vector<1x128x256xf32>
    %75 = vector.shape_cast %74 : vector<1x128x256xf32> to vector<128x256xf32>
    %cst_41 = arith.constant dense<0.000000e+00> : vector<16x256xf32>
    %76 = tpu.matmul %73, %75, %cst_41 {dimension_numbers = #tpu.dot_dimension_numbers<[1], [0], [0], [1], [0, 0, 1, 1], [], []>} : vector<16x128xf32>, vector<128x256xf32>, vector<16x256xf32> -> vector<16x256xf32>
    %77 = arith.addf %71, %76 : vector<16x256xf32>
    %c1_42 = arith.constant 1 : index
    %c0_43 = arith.constant 0 : index
    %78 = vector.load %arg7[%c1_42, %c0_43] : memref<8x256xf32, #tpu.memory_space<vmem>>, vector<1x256xf32>
    %79 = vector.broadcast %78 : vector<1x256xf32> to vector<16x256xf32>
    %80 = arith.addf %77, %79 : vector<16x256xf32>
    %cst_44 = arith.constant 0.000000e+00 : f32
    %81 = vector.broadcast %cst_44 : f32 to vector<16x256xf32>
    %82 = arith.maximumf %80, %81 : vector<16x256xf32>
    %83 = vector.shape_cast %82 : vector<16x256xf32> to vector<8x2x256xf32>
    %84 = vector.extract_strided_slice %83 {offsets = [0, 0, 0], sizes = [8, 1, 256], strides = [1, 1, 1]} : vector<8x2x256xf32> to vector<8x1x256xf32>
    %85 = vector.shape_cast %84 : vector<8x1x256xf32> to vector<8x256xf32>
    %86 = vector.extract_strided_slice %83 {offsets = [0, 1, 0], sizes = [8, 1, 256], strides = [1, 1, 1]} : vector<8x2x256xf32> to vector<8x1x256xf32>
    %87 = vector.shape_cast %86 : vector<8x1x256xf32> to vector<8x256xf32>
    %88 = arith.maximumf %85, %87 : vector<8x256xf32>
    %89 = vector.extract_strided_slice %88 {offsets = [0, 0], sizes = [8, 128], strides = [1, 1]} : vector<8x256xf32> to vector<8x128xf32>
    %90 = vector.extract_strided_slice %88 {offsets = [0, 128], sizes = [8, 128], strides = [1, 1]} : vector<8x256xf32> to vector<8x128xf32>
    %91 = arith.maximumf %89, %90 : vector<8x128xf32>
    %92 = vector.shape_cast %91 : vector<8x128xf32> to vector<2x4x128xf32>
    %cst_45 = arith.constant 0.000000e+00 : f32
    %93 = vector.broadcast %cst_45 : f32 to vector<2x128xf32>
    %94 = vector.extract_strided_slice %92 {offsets = [0, 0, 0], sizes = [2, 1, 128], strides = [1, 1, 1]} : vector<2x4x128xf32> to vector<2x1x128xf32>
    %95 = vector.shape_cast %94 : vector<2x1x128xf32> to vector<2x128xf32>
    %c0_46 = arith.constant 0 : index
    %c0_47 = arith.constant 0 : index
    %c0_48 = arith.constant 0 : index
    %96 = vector.load %arg4[%c0_46, %c0_47, %c0_48] : memref<4x128x128xf32, #tpu.memory_space<vmem>>, vector<1x128x128xf32>
    %97 = vector.shape_cast %96 : vector<1x128x128xf32> to vector<128x128xf32>
    %cst_49 = arith.constant dense<0.000000e+00> : vector<2x128xf32>
    %98 = tpu.matmul %95, %97, %cst_49 {dimension_numbers = #tpu.dot_dimension_numbers<[1], [0], [0], [1], [0, 0, 1, 1], [], []>} : vector<2x128xf32>, vector<128x128xf32>, vector<2x128xf32> -> vector<2x128xf32>
    %99 = arith.addf %93, %98 : vector<2x128xf32>
    %100 = vector.extract_strided_slice %92 {offsets = [0, 1, 0], sizes = [2, 1, 128], strides = [1, 1, 1]} : vector<2x4x128xf32> to vector<2x1x128xf32>
    %101 = vector.shape_cast %100 : vector<2x1x128xf32> to vector<2x128xf32>
    %c1_50 = arith.constant 1 : index
    %c0_51 = arith.constant 0 : index
    %c0_52 = arith.constant 0 : index
    %102 = vector.load %arg4[%c1_50, %c0_51, %c0_52] : memref<4x128x128xf32, #tpu.memory_space<vmem>>, vector<1x128x128xf32>
    %103 = vector.shape_cast %102 : vector<1x128x128xf32> to vector<128x128xf32>
    %cst_53 = arith.constant dense<0.000000e+00> : vector<2x128xf32>
    %104 = tpu.matmul %101, %103, %cst_53 {dimension_numbers = #tpu.dot_dimension_numbers<[1], [0], [0], [1], [0, 0, 1, 1], [], []>} : vector<2x128xf32>, vector<128x128xf32>, vector<2x128xf32> -> vector<2x128xf32>
    %105 = arith.addf %99, %104 : vector<2x128xf32>
    %106 = vector.extract_strided_slice %92 {offsets = [0, 2, 0], sizes = [2, 1, 128], strides = [1, 1, 1]} : vector<2x4x128xf32> to vector<2x1x128xf32>
    %107 = vector.shape_cast %106 : vector<2x1x128xf32> to vector<2x128xf32>
    %c2_54 = arith.constant 2 : index
    %c0_55 = arith.constant 0 : index
    %c0_56 = arith.constant 0 : index
    %108 = vector.load %arg4[%c2_54, %c0_55, %c0_56] : memref<4x128x128xf32, #tpu.memory_space<vmem>>, vector<1x128x128xf32>
    %109 = vector.shape_cast %108 : vector<1x128x128xf32> to vector<128x128xf32>
    %cst_57 = arith.constant dense<0.000000e+00> : vector<2x128xf32>
    %110 = tpu.matmul %107, %109, %cst_57 {dimension_numbers = #tpu.dot_dimension_numbers<[1], [0], [0], [1], [0, 0, 1, 1], [], []>} : vector<2x128xf32>, vector<128x128xf32>, vector<2x128xf32> -> vector<2x128xf32>
    %111 = arith.addf %105, %110 : vector<2x128xf32>
    %112 = vector.extract_strided_slice %92 {offsets = [0, 3, 0], sizes = [2, 1, 128], strides = [1, 1, 1]} : vector<2x4x128xf32> to vector<2x1x128xf32>
    %113 = vector.shape_cast %112 : vector<2x1x128xf32> to vector<2x128xf32>
    %c3_58 = arith.constant 3 : index
    %c0_59 = arith.constant 0 : index
    %c0_60 = arith.constant 0 : index
    %114 = vector.load %arg4[%c3_58, %c0_59, %c0_60] : memref<4x128x128xf32, #tpu.memory_space<vmem>>, vector<1x128x128xf32>
    %115 = vector.shape_cast %114 : vector<1x128x128xf32> to vector<128x128xf32>
    %cst_61 = arith.constant dense<0.000000e+00> : vector<2x128xf32>
    %116 = tpu.matmul %113, %115, %cst_61 {dimension_numbers = #tpu.dot_dimension_numbers<[1], [0], [0], [1], [0, 0, 1, 1], [], []>} : vector<2x128xf32>, vector<128x128xf32>, vector<2x128xf32> -> vector<2x128xf32>
    %117 = arith.addf %111, %116 : vector<2x128xf32>
    %c2_62 = arith.constant 2 : index
    %c0_63 = arith.constant 0 : index
    %118 = vector.load %arg7[%c2_62, %c0_63] : memref<8x256xf32, #tpu.memory_space<vmem>>, vector<1x128xf32>
    %119 = vector.broadcast %118 : vector<1x128xf32> to vector<2x128xf32>
    %120 = arith.addf %117, %119 : vector<2x128xf32>
    %cst_64 = arith.constant 0.000000e+00 : f32
    %121 = vector.broadcast %cst_64 : f32 to vector<2x128xf32>
    %122 = arith.maximumf %120, %121 : vector<2x128xf32>
    %c0_65 = arith.constant 0 : index
    %c0_66 = arith.constant 0 : index
    %123 = vector.load %arg5[%c0_65, %c0_66] : memref<128x64xf32, #tpu.memory_space<vmem>>, vector<128x64xf32>
    %cst_67 = arith.constant dense<0.000000e+00> : vector<2x64xf32>
    %124 = tpu.matmul %122, %123, %cst_67 {dimension_numbers = #tpu.dot_dimension_numbers<[1], [0], [0], [1], [0, 0, 1, 1], [], []>} : vector<2x128xf32>, vector<128x64xf32>, vector<2x64xf32> -> vector<2x64xf32>
    %c3_68 = arith.constant 3 : index
    %c0_69 = arith.constant 0 : index
    %125 = vector.load %arg7[%c3_68, %c0_69] : memref<8x256xf32, #tpu.memory_space<vmem>>, vector<1x64xf32>
    %126 = vector.broadcast %125 : vector<1x64xf32> to vector<2x64xf32>
    %127 = arith.addf %124, %126 : vector<2x64xf32>
    %cst_70 = arith.constant 0.000000e+00 : f32
    %128 = vector.broadcast %cst_70 : f32 to vector<2x64xf32>
    %129 = arith.maximumf %127, %128 : vector<2x64xf32>
    %c0_71 = arith.constant 0 : index
    %c0_72 = arith.constant 0 : index
    %130 = vector.load %arg6[%c0_71, %c0_72] : memref<64x128xf32, #tpu.memory_space<vmem>>, vector<64x128xf32>
    %cst_73 = arith.constant dense<0.000000e+00> : vector<2x128xf32>
    %131 = tpu.matmul %129, %130, %cst_73 {dimension_numbers = #tpu.dot_dimension_numbers<[1], [0], [0], [1], [0, 0, 1, 1], [], []>} : vector<2x64xf32>, vector<64x128xf32>, vector<2x128xf32> -> vector<2x128xf32>
    %c4_74 = arith.constant 4 : index
    %c0_75 = arith.constant 0 : index
    %132 = vector.load %arg7[%c4_74, %c0_75] : memref<8x256xf32, #tpu.memory_space<vmem>>, vector<1x128xf32>
    %133 = vector.broadcast %132 : vector<1x128xf32> to vector<2x128xf32>
    %134 = arith.addf %131, %133 : vector<2x128xf32>
    %c0_76 = arith.constant 0 : index
    %c0_77 = arith.constant 0 : index
    %135 = vector.load %arg8[%c0_76, %c0_77] : memref<2x128xf32, #tpu.memory_space<vmem>>, vector<2x128xf32>
    tpu.vector_store %arg8[%c0_76, %c0_77], %134 {strides = array<i32>} : memref<2x128xf32, #tpu.memory_space<vmem>>, vector<2x128xf32>,
    return
  }
  func.func @transform_0(%arg0: i32) -> (i32, i32, i32) {
    %c0_i32 = arith.constant 0 : i32
    %c0_i32_0 = arith.constant 0 : i32
    %c0_i32_1 = arith.constant 0 : i32
    return %arg0, %c0_i32, %c0_i32_0 : i32, i32, i32
  }
  func.func @transform_1(%arg0: i32) -> (i32, i32, i32) {
    %c0_i32 = arith.constant 0 : i32
    %c0_i32_0 = arith.constant 0 : i32
    %c0_i32_1 = arith.constant 0 : i32
    %c0_i32_2 = arith.constant 0 : i32
    return %c0_i32, %c0_i32_0, %c0_i32_1 : i32, i32, i32
  }
  func.func @transform_2(%arg0: i32) -> (i32, i32, i32) {
    %c0_i32 = arith.constant 0 : i32
    %c0_i32_0 = arith.constant 0 : i32
    %c0_i32_1 = arith.constant 0 : i32
    %c0_i32_2 = arith.constant 0 : i32
    return %c0_i32, %c0_i32_0, %c0_i32_1 : i32, i32, i32
  }
  func.func @transform_3(%arg0: i32) -> (i32, i32, i32) {
    %c0_i32 = arith.constant 0 : i32
    %c0_i32_0 = arith.constant 0 : i32
    %c0_i32_1 = arith.constant 0 : i32
    %c0_i32_2 = arith.constant 0 : i32
    return %c0_i32, %c0_i32_0, %c0_i32_1 : i32, i32, i32
  }
  func.func @transform_4(%arg0: i32) -> (i32, i32) {
    %c0_i32 = arith.constant 0 : i32
    %c0_i32_0 = arith.constant 0 : i32
    %c0_i32_1 = arith.constant 0 : i32
    return %c0_i32, %c0_i32_0 : i32, i32
  }
  func.func @transform_5(%arg0: i32) -> (i32, i32) {
    %c0_i32 = arith.constant 0 : i32
    %c0_i32_0 = arith.constant 0 : i32
    %c0_i32_1 = arith.constant 0 : i32
    return %c0_i32, %c0_i32_0 : i32, i32
  }
  func.func @transform_6(%arg0: i32) -> (i32, i32) {
    %c0_i32 = arith.constant 0 : i32
    %c0_i32_0 = arith.constant 0 : i32
    %c0_i32_1 = arith.constant 0 : i32
    return %c0_i32, %c0_i32_0 : i32, i32
  }
  func.func @transform_7(%arg0: i32) -> (i32, i32) {
    %c0_i32 = arith.constant 0 : i32
    %c0_i32_0 = arith.constant 0 : i32
    return %arg0, %c0_i32 : i32, i32
  }
}

</mosaic_0001>

<bundles_post_ra>
// kernel: classifier_forward.1
= control target key start
LH: loop header
LB: loop body
LE: loop exit
PB: predicated region body
PF: predicated region fallthrough
CT: control target
= control target key end

     0   :  { %12 = vsyncpa [#allocation3], 0  ;;  %s4214_s0 = inlined_call_operand.vmem [shape: f32[2,28,84], index: 0, kind: input, shape index: {}]   ;;  %s4215_s1 = inlined_call_operand.hbm [shape: f32[5,84,256], index: 1, kind: input, shape index: {}]   ;;  %s4216_s2 = inlined_call_operand.hbm [shape: f32[5,128,256], index: 2, kind: input, shape index: {}]   ;;  %s4217_s3 = inlined_call_operand.vmem [shape: f32[4,128,128], index: 3, kind: input, shape index: {}]   ;;  %s4218_s4 = inlined_call_operand.vmem [shape: f32[128,64], index: 4, kind: input, shape index: {}]   ;;  %s4219_s5 = inlined_call_operand.vmem [shape: f32[64,128], index: 5, kind: input, shape index: {}]   ;;  %s4220_s6 = inlined_call_operand.vmem [shape: f32[8,256], index: 6, kind: input, shape index: {}]   ;;  %s4221_s7 = inlined_call_operand.hbm [shape: f32[2,128], index: 7, kind: output, shape index: {}]  }
   0x1   :  { %13 = vsyncpa [#allocation6], 0 }
   0x2   :  { %14 = vsyncpa [#allocation4], 0  ;;  %s3222_s24 = smov [#allocation2]  }
   0x3   :  { %s22_s25 = sshll.u32 %s3222_s24, 4  ;;  %s23_s25 = int_to_ptr.vmem [resolvable:$true] %s22_s25 }
   0x4   :  { %s3164_s26 = scalar_lea.vmem %s23_s25, 14080  ;;  %p3169_p1 = scmp.lt.s32.totalorder %s23_s25, %s23_s25 }
   0x5   :  { %p3165_p0 = scmp.ne.s32.totalorder %s23_s25, %s3164_s26  ;;  %p3170_p2 = scmp.lt.s32.totalorder %s3164_s26, %s3164_s26 }
   0x7   :  { %p3171_p3 = por %p3170_p2, %p3169_p1 }
   0x9   :  { %p3172_p4 = pnand %p3171_p3, %p3165_p0 }
   0xb   :  { %3175 = shalt.err (!%p3172_p4)
}
   0xc   :  { %s3223_s27 = smov 256   ;;  %s3224_s28 = smov 16  }
   0xd   :  { %28 = dma.hbm_to_vmem [thread:$0]  %s4215_s1, 14080, %s23_s25, [#allocation3], %s3223_s27, %s3223_s27, %s3224_s28  }
   0xe   :  { %s3225_s8 = smov [#allocation5]  }
   0xf   :  { %s34_s9 = sshll.u32 %s3225_s8, 4  ;;  %s35_s9 = int_to_ptr.vmem [resolvable:$true] %s34_s9 }
  0x10   :  { %s3184_s10 = scalar_lea.vmem %s35_s9, 20480  ;;  %p3189_p6 = scmp.lt.s32.totalorder %s35_s9, %s35_s9 }
  0x11   :  { %p3185_p5 = scmp.ne.s32.totalorder %s35_s9, %s3184_s10  ;;  %p3190_p7 = scmp.lt.s32.totalorder %s3184_s10, %s3184_s10 }
  0x13   :  { %p3191_p8 = por %p3190_p7, %p3189_p6 }
  0x15   :  { %p3192_p9 = pnand %p3191_p8, %p3185_p5 }
  0x17   :  { %3195 = shalt.err (!%p3192_p9)
}
  0x18   :  { %40 = dma.hbm_to_vmem [thread:$0]  %s4216_s2, 20480, %s35_s9, [#allocation6], %s3223_s27, %s3223_s27, %s3224_s28  }
  0x19   :  { %3216 = dma.done.wait [#allocation3], 14080  }
  0x1a   :  { %3217 = vsyncadd [#allocation3], 4294953216 }
  0x1b   :  { %3218 = dma.done.wait [#allocation6], 20480  }
  0x1c   :  { %3219 = vsyncadd [#allocation6], 4294946816  ;;  %v3226_v0 = vmov 0.0   ;;  %vm144_vm0 = vcmask 1043456   ;;  %v130_v1 = vld [vmem:[#allocation2 + $0x158] sm:$0xf] }
  0x1d   :  { %215 = vmatprep.mubr.f32.mxu0 %v3226_v0  ;;  %334 = vmatprep.mubr.f32.mxu1 %v3226_v0  ;;  %v84_v2 = vld [vmem:[#allocation2 + $0xa8] sm:$0xf]  ;;  %v129_v3 = vld [vmem:[#allocation2 + $0x150] sm:$0xf]  ;;  %v83_v4 = vld [vmem:[#allocation2 + $0xa0] sm:$0xf] }
  0x1e   :  { %2738 = vmatprep.subr.msk.mxu0 %vm144_vm0, %v130_v1  ;;  %2746 = vmatprep.subr.msk.mxu1 %vm144_vm0, %v84_v2  ;;  %v128_v5 = vld [vmem:[#allocation2 + $0x148] sm:$0xff]  ;;  %v82_v6 = vld [vmem:[#allocation2 + $0x98] sm:$0xff]  ;;  %v127_v7 = vld [vmem:[#allocation2 + $0x140] sm:$0xff]  ;;  %vm93_vm1 = vcmask 1046528   ;;  %vm131_vm2 = vcmask 687104   ;;  %vm371_vm3 = vcmask 1045504  }
  0x1f   :  { %2739 = vmatpush1.msk.msra.mxu0 %vm144_vm0, %v129_v3  ;;  %2747 = vmatpush1.msk.msra.mxu1 %vm144_vm0, %v83_v4  ;;  %v81_v8 = vld [vmem:[#allocation2 + $0x90] sm:$0xff]  ;;  %v126_v9 = vld [vmem:[#allocation2 + $0x138] sm:$0xff]  ;;  %v80_v10 = vld [vmem:[#allocation2 + $0x88] sm:$0xff]  ;;  %vm540_vm4 = vcmask 1044480   ;;  %vm1394_vm5 = vcmask 1041409   ;;  %vm1396_vm6 = vcmask 1042434  }
  0x20   :  { %163 = vmatprep.subr.mxu0 %v128_v5  ;;  %282 = vmatprep.subr.mxu1 %v82_v6  ;;  %v125_v11 = vld [vmem:[#allocation2 + $0x130] sm:$0xff]  ;;  %v79_v12 = vld [vmem:[#allocation2 + $0x80] sm:$0xff]  ;;  %v124_v13 = vld [vmem:[#allocation2 + $0x128] sm:$0xff]  ;;  %vm1398_vm7 = vcmask 1043459   ;;  %vm1400_vm8 = vcmask 1044484   ;;  %vm1402_vm9 = vcmask 1045509  }
  0x21   :  { %164 = vmatpush1.msra.mxu0 %v127_v7  ;;  %283 = vmatpush1.msra.mxu1 %v81_v8  ;;  %v78_v14 = vld [vmem:[#allocation2 + $0x78] sm:$0xff]  ;;  %v123_v15 = vld [vmem:[#allocation2 + $0x120] sm:$0xff]  ;;  %v77_v16 = vld [vmem:[#allocation2 + $0x70] sm:$0xff]  ;;  %vm1404_vm10 = vcmask 1046534   ;;  %vm1406_vm11 = vcmask 1047559   ;;  %vm3228_vm12 = vmmov 0  }
  0x22   :  { %165 = vmatprep.subr.mxu0 %v126_v9  ;;  %284 = vmatprep.subr.mxu1 %v80_v10  ;;  %v122_v17 = vld [vmem:[#allocation2 + $0x118] sm:$0xff]  ;;  %v76_v18 = vld [vmem:[#allocation2 + $0x68] sm:$0xff]  ;;  %v121_v19 = vld [vmem:[#allocation2 + $0x110] sm:$0xff]  ;;  %vm2647_vm13 = vcmask 523264   ;;  %s3229_s27 = smov [#allocation7]  }
  0x23   :  { %166 = vmatpush1.msra.mxu0 %v125_v11  ;;  %285 = vmatpush1.msra.mxu1 %v79_v12  ;;  %v75_v20 = vld [vmem:[#allocation2 + $0x60] sm:$0xff]  ;;  %v120_v21 = vld [vmem:[#allocation2 + $0x108] sm:$0xff]  ;;  %v74_v22 = vld [vmem:[#allocation2 + $0x58] sm:$0xff] }
  0x24   :  { %167 = vmatprep.subr.mxu0 %v124_v13  ;;  %286 = vmatprep.subr.mxu1 %v78_v14  ;;  %v119_v23 = vld [vmem:[#allocation2 + $0x100] sm:$0xff]  ;;  %v73_v24 = vld [vmem:[#allocation2 + $0x50] sm:$0xff]  ;;  %v118_v25 = vld [vmem:[#allocation2 + $0xf8] sm:$0xff] }
  0x25   :  { %168 = vmatpush1.msra.mxu0 %v123_v15  ;;  %287 = vmatpush1.msra.mxu1 %v77_v16  ;;  %v72_v26 = vld [vmem:[#allocation2 + $0x48] sm:$0xff]  ;;  %v117_v27 = vld [vmem:[#allocation2 + $0xf0] sm:$0xff]  ;;  %v71_v28 = vld [vmem:[#allocation2 + $0x40] sm:$0xff] }
  0x26   :  { %169 = vmatprep.subr.mxu0 %v122_v17  ;;  %288 = vmatprep.subr.mxu1 %v76_v18  ;;  %v116_v29 = vld [vmem:[#allocation2 + $0xe8] sm:$0xff]  ;;  %v70_v30 = vld [vmem:[#allocation2 + $0x38] sm:$0xff]  ;;  %v115_v31 = vld [vmem:[#allocation2 + $0xe0] sm:$0xff] }
  0x27   :  { %170 = vmatpush1.msra.mxu0 %v121_v19  ;;  %289 = vmatpush1.msra.mxu1 %v75_v20  ;;  %v69_v32 = vld [vmem:[#allocation2 + $0x30] sm:$0xff]  ;;  %v114_v33 = vld [vmem:[#allocation2 + $0xd8] sm:$0xff]  ;;  %v68_v34 = vld [vmem:[#allocation2 + $0x28] sm:$0xff] }
  0x28   :  { %171 = vmatprep.subr.mxu0 %v120_v21  ;;  %290 = vmatprep.subr.mxu1 %v74_v22  ;;  %v3285_v35 = vld [vmem:[%s4214_s0] sm:$0xff]  ;;  %v113_v36 = vld [vmem:[#allocation2 + $0xd0] sm:$0xff]  ;;  %v3290_v38 = vld [vmem:[%s4214_s0 + $0x8] sm:$0xff] }
  0x29   :  { %172 = vmatpush1.msra.mxu0 %v119_v23  ;;  %291 = vmatpush1.msra.mxu1 %v73_v24  ;;  %v67_v37 = vld [vmem:[#allocation2 + $0x20] sm:$0xff]  ;;  %v112_v39 = vld [vmem:[#allocation2 + $0xc8] sm:$0xff]  ;;  %v66_v40 = vld [vmem:[#allocation2 + $0x18] sm:$0xff]  ;;  %v94_v41 = vrot.slane %v3285_v35, 1  ;;  %v95_v42 = vrot.slane %v3290_v38, 1 }
  0x2a   :  { %173 = vmatprep.subr.mxu0 %v118_v25  ;;  %292 = vmatprep.subr.mxu1 %v72_v26  ;;  %v111_v43 = vld [vmem:[#allocation2 + $0xc0] sm:$0xff]  ;;  %v65_v44 = vld [vmem:[#allocation2 + $0x10] sm:$0xff]  ;;  %v110_v46 = vld [vmem:[#allocation2 + $0xb8] sm:$0xff] }
  0x2b   :  { %174 = vmatpush1.msra.mxu0 %v117_v27  ;;  %293 = vmatpush1.msra.mxu1 %v71_v28  ;;  %v3297_v45 = vld [vmem:[%s4214_s0 + $0x10] sm:$0xff]  ;;  %v64_v47 = vld [vmem:[#allocation2 + $0x8] sm:$0xff]  ;;  %v63_v49 = vld [vmem:[#allocation2] sm:$0xff]  ;;  %v96_v50 = vsel %vm93_vm1, %v94_v41, %v95_v42 }
  0x2c   :  { %175 = vmatprep.subr.mxu0 %v116_v29  ;;  %294 = vmatprep.subr.mxu1 %v70_v30  ;;  %v109_v48 = vld [vmem:[#allocation2 + $0xb0] sm:$0xff]  ;;  %v97_v51 = vrot.slane %v3297_v45, 1  ;;  %v408_v52 = vld [vmem:[#allocation2 + $0x208] sm:$0xf]  ;;  %v407_v53 = vld [vmem:[#allocation2 + $0x200] sm:$0xf] }
  0x2d   :  { %176 = vmatpush1.msra.mxu0 %v115_v31  ;;  %295 = vmatpush1.msra.mxu1 %v69_v32  ;;  %v3304_v54 = vld [vmem:[%s4214_s0 + $0x18] sm:$0xf]  ;;  %v405_v58 = vld [vmem:[#allocation2 + $0x1f0] sm:$0xff]  ;;  %v404_v61 = vld [vmem:[#allocation2 + $0x1e8] sm:$0xff] }
  0x2e   :  { %177 = vmatprep.subr.mxu0 %v114_v33  ;;  %296 = vmatprep.subr.mxu1 %v68_v34  ;;  %v406_v55 = vld [vmem:[#allocation2 + $0x1f8] sm:$0xff]  ;;  %v98_v57 = vsel %vm93_vm1, %v95_v42, %v97_v51  ;;  %v576_v59 = vld [vmem:[#allocation2 + $0x2b0] sm:$0xf]  ;;  %v99_v60 = vrot.slane %v3304_v54, 1  ;;  %v575_v62 = vld [vmem:[#allocation2 + $0x2a8] sm:$0xff]  ;;  %v372_v42 = vrot.slane %v3285_v35, 2 }
  0x2f   :  { %178 = vmatpush1.msra.mxu0 %v113_v36  ;;  %297 = vmatpush1.msra.mxu1 %v67_v37  ;;  %v577_v56 = vld [vmem:[#allocation2 + $0x2b8] sm:$0xf]  ;;  %v403_v63 = vld [vmem:[#allocation2 + $0x1e0] sm:$0xff]  ;;  %v3328_v3 = vld [vmem:[%s4214_s0 + $0x28] sm:$0xff] }
  0x30   :  { %179 = vmatprep.subr.mxu0 %v112_v39  ;;  %298 = vmatprep.subr.mxu1 %v66_v40  ;;  %v402_v1 = vld [vmem:[#allocation2 + $0x1d8] sm:$0xff]  ;;  %v3323_v2 = vld [vmem:[%s4214_s0 + $0x20] sm:$0xff]  ;;  %v100_v5 = vsel %vm93_vm1, %v97_v51, %v99_v60  ;;  %v401_v6 = vld [vmem:[#allocation2 + $0x1d0] sm:$0xff]  ;;  %v102_v10 = vrot.slane %v3328_v3, 1  ;;  %v542_v51 = vrot.slane %v3290_v38, 3 }
  0x31   :  { %180 = vmatpush1.msra.mxu0 %v111_v43  ;;  %299 = vmatpush1.msra.mxu1 %v65_v44  ;;  %v574_v4 = vld [vmem:[#allocation2 + $0x2a0] sm:$0xff]  ;;  %v573_v7 = vld [vmem:[#allocation2 + $0x298] sm:$0xff]  ;;  %v400_v8 = vld [vmem:[#allocation2 + $0x1c8] sm:$0xff]  ;;  %v101_v9 = vrot.slane %v3323_v2, 1  ;;  %v373_v43 = vrot.slane %v3290_v38, 2 }
  0x32   :  { %181 = vmatprep.subr.mxu0 %v110_v46  ;;  %300 = vmatprep.subr.mxu1 %v64_v47  ;;  %v572_v11 = vld [vmem:[#allocation2 + $0x290] sm:$0xff]  ;;  %v399_v12 = vld [vmem:[#allocation2 + $0x1c0] sm:$0xff]  ;;  %v571_v13 = vld [vmem:[#allocation2 + $0x288] sm:$0xff] }
  0x33   :  { %182 = vmatpush1.msra.mxu0 %v109_v48  ;;  %301 = vmatpush1.msra.mxu1 %v63_v49  ;;  %v398_v14 = vld [vmem:[#allocation2 + $0x1b8] sm:$0xff]  ;;  %v3341_v15 = vld [vmem:[%s4214_s0 + $0x30] sm:$0xff]  ;;  %v570_v16 = vld [vmem:[#allocation2 + $0x280] sm:$0xff]  ;;  %v103_v17 = vsel %vm93_vm1, %v101_v9, %v102_v10 }
  0x34   :  { %2740 = vmatmul.mubr.msk.f32.vlgmr.msra.gmra.mxu0 %vm131_vm2, %v96_v50  ;;  %2748 = vmatmul.mubr.msk.f32.vlgmr.msra.gmra.mxu1 %vm131_vm2, %v3285_v35  ;;  %v397_v18 = vld [vmem:[#allocation2 + $0x1b0] sm:$0xff]  ;;  %v569_v19 = vld [vmem:[#allocation2 + $0x278] sm:$0xff]  ;;  %v396_v20 = vld [vmem:[#allocation2 + $0x1a8] sm:$0xff]  ;;  %v104_v21 = vrot.slane %v3341_v15, 1  ;;  %v541_v50 = vrot.slane %v3285_v35, 3 }
  0x35   :  { %2754 = vmatprep.subr.msk.mxu0 %vm144_vm0, %v408_v52  ;;  %221 = vmatprep.mubr.f32.mxu0 %v3226_v0  ;;  %v568_v22 = vld [vmem:[#allocation2 + $0x270] sm:$0xff]  ;;  %v567_v23 = vld [vmem:[#allocation2 + $0x268] sm:$0xff]  ;;  %v395_v24 = vld [vmem:[#allocation2 + $0x1a0] sm:$0xff] }
  0x36   :  { %2755 = vmatpush1.msk.msra.mxu0 %vm144_vm0, %v407_v53  ;;  %340 = vmatprep.mubr.f32.mxu1 %v3226_v0  ;;  %v566_v25 = vld [vmem:[#allocation2 + $0x260] sm:$0xff]  ;;  %v3353_v26 = vld [vmem:[%s4214_s0 + $0x38] sm:$0xf]  ;;  %v105_v27 = vsel %vm93_vm1, %v102_v10, %v104_v21  ;;  %v393_v30 = vld [vmem:[#allocation2 + $0x190] sm:$0xff]  ;;  %v374_v53 = vsel %vm371_vm3, %v372_v42, %v373_v43  ;;  %v543_v60 = vsel %vm540_vm4, %v541_v50, %v542_v51  ;;  %v710_v42 = vrot.slane %v3290_v38, 4 }
  0x37   :  { %439 = vmatprep.subr.mxu0 %v406_v55  ;;  %2762 = vmatprep.subr.msk.mxu1 %vm144_vm0, %v577_v56  ;;  %v394_v28 = vld [vmem:[#allocation2 + $0x198] sm:$0xff]  ;;  %v564_v31 = vld [vmem:[#allocation2 + $0x250] sm:$0xff]  ;;  %v106_v32 = vrot.slane %v3353_v26, 1  ;;  %v392_v33 = vld [vmem:[#allocation2 + $0x188] sm:$0xff]  ;;  %v716_v50 = vrot.slane %v3323_v2, 4 }
  0x38   :  { %2741 = vmatmul.mubr.msk.f32.gmra.mxu0 %vm131_vm2, %v98_v57  ;;  %2749 = vmatmul.mubr.msk.f32.gmra.mxu1 %vm131_vm2, %v3290_v38  ;;  %v565_v29 = vld [vmem:[#allocation2 + $0x258] sm:$0xff]  ;;  %v563_v34 = vld [vmem:[#allocation2 + $0x248] sm:$0xff]  ;;  %v391_v36 = vld [vmem:[#allocation2 + $0x180] sm:$0xff]  ;;  %v375_v57 = vrot.slane %v3297_v45, 2  ;;  %v712_v38 = vrot.slane %v3297_v45, 4 }
  0x39   :  { %440 = vmatpush1.msra.mxu0 %v405_v58  ;;  %2763 = vmatpush1.msk.msra.mxu1 %vm144_vm0, %v576_v59  ;;  %v562_v37 = vld [vmem:[#allocation2 + $0x240] sm:$0xff]  ;;  %v107_v39 = vsel %vm93_vm1, %v104_v21, %v106_v32  ;;  %v390_v40 = vld [vmem:[#allocation2 + $0x178] sm:$0xff]  ;;  %v389_v44 = vld [vmem:[#allocation2 + $0x170] sm:$0xff] }
  0x3a   :  { %441 = vmatprep.subr.mxu0 %v404_v61  ;;  %608 = vmatprep.subr.mxu1 %v575_v62  ;;  %v561_v41 = vld [vmem:[#allocation2 + $0x238] sm:$0xff]  ;;  %v560_v46 = vld [vmem:[#allocation2 + $0x230] sm:$0xff]  ;;  %v388_v47 = vld [vmem:[#allocation2 + $0x168] sm:$0xff]  ;;  %v544_v61 = vrot.slane %v3297_v45, 3 }
  0x3b   :  { %442 = vmatpush1.msra.mxu0 %v403_v63  ;;  %227 = vmatprep.mubr.f32.mxu0 %v3226_v0  ;;  %v559_v48 = vld [vmem:[#allocation2 + $0x228] sm:$0xff]  ;;  %v387_v49 = vld [vmem:[#allocation2 + $0x160] sm:$0xff]  ;;  %v557_v55 = vld [vmem:[#allocation2 + $0x218] sm:$0xff]  ;;  %v376_v63 = vsel %vm371_vm3, %v373_v43, %v375_v57 }
  0x3c   :  { %346 = vmatprep.mubr.f32.mxu1 %v3226_v0  ;;  %443 = vmatprep.subr.mxu0 %v402_v1  ;;  %v558_v52 = vld [vmem:[#allocation2 + $0x220] sm:$0xff]  ;;  %v745_v56 = vld [vmem:[#allocation2 + $0x368] sm:$0xf]  ;;  %v556_v58 = vld [vmem:[#allocation2 + $0x210] sm:$0xff]  ;;  %v377_v1 = vrot.slane %v3304_v54, 2 }
  0x3d   :  { %609 = vmatpush1.msra.mxu1 %v574_v4  ;;  %2742 = vmatmul.mubr.msk.f32.gmra.mxu0 %vm131_vm2, %v100_v5  ;;  %v744_v59 = vld [vmem:[#allocation2 + $0x360] sm:$0xf]  ;;  %v743_v62 = vld [vmem:[#allocation2 + $0x358] sm:$0xff]  ;;  %v742_v4 = vld [vmem:[#allocation2 + $0x350] sm:$0xff] }
  0x3e   :  { %2750 = vmatmul.mubr.msk.f32.gmra.mxu1 %vm131_vm2, %v3297_v45  ;;  %444 = vmatpush1.msra.mxu0 %v401_v6  ;;  %v741_v5 = vld [vmem:[#allocation2 + $0x348] sm:$0xff]  ;;  %v545_v6 = vsel %vm540_vm4, %v542_v51, %v544_v61  ;;  %v739_v9 = vld [vmem:[#allocation2 + $0x338] sm:$0xff]  ;;  %v378_v10 = vsel %vm371_vm3, %v375_v57, %v377_v1  ;;  %v730_v32 = vld [vmem:[#allocation2 + $0x2f0] sm:$0xff]  ;;  %v717_v51 = vrot.slane %v3328_v3, 4 }
  0x3f   :  { %610 = vmatprep.subr.mxu1 %v573_v7  ;;  %445 = vmatprep.subr.mxu0 %v400_v8  ;;  %v546_v7 = vrot.slane %v3304_v54, 3  ;;  %v740_v8 = vld [vmem:[#allocation2 + $0x340] sm:$0xff]  ;;  %v726_v43 = vld [vmem:[#allocation2 + $0x2d0] sm:$0xff] }
  0x40   :  { %611 = vmatpush1.msra.mxu1 %v572_v11  ;;  %446 = vmatpush1.msra.mxu0 %v399_v12  ;;  %v379_v11 = vrot.slane %v3323_v2, 2  ;;  %v380_v12 = vrot.slane %v3328_v3, 2  ;;  %v1312_v57 = vld [vmem:[#allocation5 + $0x1f0] sm:$0xff] }
  0x41   :  { %612 = vmatprep.subr.mxu1 %v571_v13  ;;  %233 = vmatprep.mubr.f32.mxu0 %v3226_v0  ;;  %v738_v13 = vld [vmem:[#allocation2 + $0x330] sm:$0xff]  ;;  %v1308_v1 = vld [vmem:[#allocation5 + $0x1d0] sm:$0xff] }
  0x42   :  { %352 = vmatprep.mubr.f32.mxu1 %v3226_v0  ;;  %447 = vmatprep.subr.mxu0 %v398_v14  ;;  %v737_v14 = vld [vmem:[#allocation2 + $0x328] sm:$0xff]  ;;  %v381_v21 = vsel %vm371_vm3, %v379_v11, %v380_v12  ;;  %v1304_v11 = vld [vmem:[#allocation5 + $0x1b0] sm:$0xff] }
  0x43   :  { %613 = vmatpush1.msra.mxu1 %v570_v16  ;;  %2743 = vmatmul.mubr.msk.f32.gmra.mxu0 %vm131_vm2, %v103_v17  ;;  %v547_v16 = vsel %vm540_vm4, %v544_v61, %v546_v7  ;;  %v548_v17 = vrot.slane %v3323_v2, 3  ;;  %v1276_v61 = vld [vmem:[#allocation5 + $0xd8] sm:$0xff]  ;;  %v1306_v7 = vld [vmem:[#allocation5 + $0x1c0] sm:$0xff] }
  0x44   :  { %2751 = vmatmul.mubr.msk.f32.gmra.mxu1 %vm131_vm2, %v3323_v2  ;;  %448 = vmatpush1.msra.mxu0 %v397_v18  ;;  %v549_v18 = vrot.slane %v3328_v3, 3 }
  0x45   :  { %614 = vmatprep.subr.mxu1 %v569_v19  ;;  %449 = vmatprep.subr.mxu0 %v396_v20  ;;  %v736_v19 = vld [vmem:[#allocation2 + $0x320] sm:$0xff]  ;;  %v735_v20 = vld [vmem:[#allocation2 + $0x318] sm:$0xff] }
  0x46   :  { %615 = vmatpush1.msra.mxu1 %v568_v22  ;;  %239 = vmatprep.mubr.f32.mxu0 %v3226_v0  ;;  %v382_v22 = vrot.slane %v3341_v15, 2 }
  0x47   :  { %616 = vmatprep.subr.mxu1 %v567_v23  ;;  %358 = vmatprep.mubr.f32.mxu1 %v3226_v0  ;;  %v734_v23 = vld [vmem:[#allocation2 + $0x310] sm:$0xff] }
  0x48   :  { %450 = vmatpush1.msra.mxu0 %v395_v24  ;;  %617 = vmatpush1.msra.mxu1 %v566_v25  ;;  %v550_v24 = vsel %vm540_vm4, %v548_v17, %v549_v18  ;;  %v733_v25 = vld [vmem:[#allocation2 + $0x308] sm:$0xff] }
  0x49   :  { %2744 = vmatmul.mubr.msk.f32.gmra.mxu0 %vm131_vm2, %v105_v27  ;;  %2752 = vmatmul.mubr.msk.f32.gmra.mxu1 %vm131_vm2, %v3328_v3  ;;  %v551_v27 = vrot.slane %v3341_v15, 3  ;;  %v1280_v3 = vld [vmem:[#allocation5 + $0xf8] sm:$0xff] }
  0x4a   :  { %451 = vmatprep.subr.mxu0 %v394_v28  ;;  %618 = vmatprep.subr.mxu1 %v565_v29  ;;  %v732_v28 = vld [vmem:[#allocation2 + $0x300] sm:$0xff]  ;;  %v383_v29 = vsel %vm371_vm3, %v380_v12, %v382_v22  ;;  %v1270_v12 = vld [vmem:[#allocation5 + $0xa8] sm:$0xff]  ;;  %v1268_v17 = vld [vmem:[#allocation5 + $0x98] sm:$0xff] }
  0x4b   :  { %452 = vmatpush1.msra.mxu0 %v393_v30  ;;  %619 = vmatpush1.msra.mxu1 %v564_v31  ;;  %v731_v30 = vld [vmem:[#allocation2 + $0x2f8] sm:$0xff]  ;;  %v384_v31 = vrot.slane %v3353_v26, 2 }
  0x4c   :  { %453 = vmatprep.subr.mxu0 %v392_v33  ;;  %620 = vmatprep.subr.mxu1 %v563_v34  ;;  %v552_v33 = vsel %vm540_vm4, %v549_v18, %v551_v27  ;;  %v729_v34 = vld [vmem:[#allocation2 + $0x2e8] sm:$0xff] }
  0x4d   :  { %245 = vmatprep.mubr.f32.mxu0 %v3226_v0  ;;  %364 = vmatprep.mubr.f32.mxu1 %v3226_v0  ;;  %v1301_v18 = vld [vmem:[#allocation5 + $0x198] sm:$0xff] }
  0x4e   :  { %454 = vmatpush1.msra.mxu0 %v391_v36  ;;  %621 = vmatpush1.msra.mxu1 %v562_v37  ;;  %v553_v36 = vrot.slane %v3353_v26, 3  ;;  %v728_v37 = vld [vmem:[#allocation2 + $0x2e0] sm:$0xff] }
  0x4f   :  { %2745 = vmatmul.mubr.msk.f32.gmra.mxu0 %vm131_vm2, %v107_v39  ;;  %2753 = vmatmul.mubr.msk.f32.gmra.mxu1 %vm131_vm2, %v3341_v15  ;;  %v385_v39 = vsel %vm371_vm3, %v382_v22, %v384_v31  ;;  %v1299_v22 = vld [vmem:[#allocation5 + $0x188] sm:$0xff] }
  0x50   :  { %455 = vmatprep.subr.mxu0 %v390_v40  ;;  %622 = vmatprep.subr.mxu1 %v561_v41  ;;  %v727_v40 = vld [vmem:[#allocation2 + $0x2d8] sm:$0xff]  ;;  %v709_v41 = vrot.slane %v3285_v35, 4 }
  0x51   :  { %456 = vmatpush1.msra.mxu0 %v389_v44  ;;  %623 = vmatpush1.msra.mxu1 %v560_v46  ;;  %v554_v44 = vsel %vm540_vm4, %v551_v27, %v553_v36  ;;  %v725_v46 = vld [vmem:[#allocation2 + $0x2c8] sm:$0xff]  ;;  %v1295_v31 = vld [vmem:[#allocation5 + $0x168] sm:$0xff] }
  0x52   :  { %457 = vmatprep.subr.mxu0 %v388_v47  ;;  %624 = vmatprep.subr.mxu1 %v559_v48  ;;  %v724_v47 = vld [vmem:[#allocation2 + $0x2c0] sm:$0xff]  ;;  %v711_v35 = vsel %vm144_vm0, %v709_v41, %v710_v42  ;;  %v713_v48 = vsel %vm144_vm0, %v710_v42, %v712_v38  ;;  %v1297_v27 = vld [vmem:[#allocation5 + $0x178] sm:$0xff]  ;;  %v1291_v41 = vld [vmem:[#allocation5 + $0x148] sm:$0xff] }
  0x53   :  { %458 = vmatpush1.msra.mxu0 %v387_v49  ;;  %491 = vmatprep.mubr.f32.mxu0 %v3226_v0  ;;  %v714_v49 = vrot.slane %v3304_v54, 4  ;;  %v1293_v36 = vld [vmem:[#allocation5 + $0x158] sm:$0xff]  ;;  %v1257_v42 = vld [vmem:[#allocation5 + $0x40] sm:$0xff] }
  0x54   :  { %625 = vmatpush1.msra.mxu1 %v558_v52  ;;  %2756 = vmatmul.mubr.msk.f32.vlgmr.msra.gmra.mxu0 %vm131_vm2, %v374_v53  ;;  %v718_v52 = vsel %vm144_vm0, %v716_v50, %v717_v51  ;;  %v719_v53 = vrot.slane %v3341_v15, 4  ;;  %v1313_v15 = vld [vmem:[#allocation5 + $0x1f8] sm:$0xff] }
  0x55   :  { %626 = vmatprep.subr.mxu1 %v557_v55  ;;  %2770 = vmatprep.subr.msk.mxu0 %vm144_vm0, %v745_v56  ;;  %v715_v45 = vsel %vm144_vm0, %v712_v38, %v714_v49  ;;  %v721_v55 = vrot.slane %v3353_v26, 4  ;;  %v1279_v56 = vld [vmem:[#allocation5 + $0xf0] sm:$0xff]  ;;  %v1311_v26 = vld [vmem:[#allocation5 + $0x1e8] sm:$0xff]  ;;  %v1253_v49 = vld [vmem:[#allocation5 + $0x20] sm:$0xff] }
  0x56   :  { %627 = vmatpush1.msra.mxu1 %v556_v58  ;;  %660 = vmatprep.mubr.f32.mxu1 %v3226_v0  ;;  %v720_v54 = vsel %vm144_vm0, %v717_v51, %v719_v53  ;;  %v1278_v58 = vld [vmem:[#allocation5 + $0xe8] sm:$0xff]  ;;  %v1252_v50 = vld [vmem:[#allocation5 + $0x18] sm:$0xff] }
  0x57   :  { %2771 = vmatpush1.msk.msra.mxu0 %vm144_vm0, %v744_v59  ;;  %2764 = vmatmul.mubr.msk.f32.vlgmr.msra.gmra.mxu1 %vm131_vm2, %v543_v60  ;;  %v722_v2 = vsel %vm144_vm0, %v719_v53, %v721_v55  ;;  %v1277_v59 = vld [vmem:[#allocation5 + $0xe0] sm:$0xff]  ;;  %v1254_v38 = vld [vmem:[#allocation5 + $0x28] sm:$0xff]  ;;  %v1285_v51 = vld [vmem:[#allocation5 + $0x118] sm:$0xff] }
  0x58   :  { %497 = vmatprep.mubr.f32.mxu0 %v3226_v0  ;;  %776 = vmatprep.subr.mxu0 %v743_v62  ;;  %v1310_v60 = vld [vmem:[#allocation5 + $0x1e0] sm:$0xff]  ;;  %v1309_v62 = vld [vmem:[#allocation5 + $0x1d8] sm:$0xff]  ;;  %v1284_v53 = vld [vmem:[#allocation5 + $0x110] sm:$0xff] }
  0x59   :  { %2757 = vmatmul.mubr.msk.f32.gmra.mxu0 %vm131_vm2, %v376_v63  ;;  %666 = vmatprep.mubr.f32.mxu1 %v3226_v0  ;;  %v1275_v63 = vld [vmem:[#allocation5 + $0xd0] sm:$0xff]  ;;  %v1283_v55 = vld [vmem:[#allocation5 + $0x108] sm:$0xff] }
  0x5a   :  { %777 = vmatpush1.msra.mxu0 %v742_v4  ;;  %503 = vmatprep.mubr.f32.mxu0 %v3226_v0  ;;  %v1274_v4 = vld [vmem:[#allocation5 + $0xc8] sm:$0xff] }
  0x5b   :  { %778 = vmatprep.subr.mxu0 %v741_v5  ;;  %2765 = vmatmul.mubr.msk.f32.gmra.mxu1 %vm131_vm2, %v545_v6  ;;  %v1307_v5 = vld [vmem:[#allocation5 + $0x1c8] sm:$0xff]  ;;  %v1273_v6 = vld [vmem:[#allocation5 + $0xc0] sm:$0xff] }
  0x5c   :  { %779 = vmatpush1.msra.mxu0 %v740_v8  ;;  %672 = vmatprep.mubr.f32.mxu1 %v3226_v0  ;;  %v1272_v8 = vld [vmem:[#allocation5 + $0xb8] sm:$0xff] }
  0x5d   :  { %780 = vmatprep.subr.mxu0 %v739_v9  ;;  %2758 = vmatmul.mubr.msk.f32.gmra.mxu0 %vm131_vm2, %v378_v10  ;;  %v1305_v9 = vld [vmem:[#allocation5 + $0x1b8] sm:$0xff]  ;;  %v1271_v10 = vld [vmem:[#allocation5 + $0xb0] sm:$0xff] }
  0x5e   :  { %781 = vmatpush1.msra.mxu0 %v738_v13  ;;  %509 = vmatprep.mubr.f32.mxu0 %v3226_v0  ;;  %v1303_v13 = vld [vmem:[#allocation5 + $0x1a8] sm:$0xff] }
  0x5f   :  { %782 = vmatprep.subr.mxu0 %v737_v14  ;;  %2766 = vmatmul.mubr.msk.f32.gmra.mxu1 %vm131_vm2, %v547_v16  ;;  %v1269_v14 = vld [vmem:[#allocation5 + $0xa0] sm:$0xff] }
  0x60   :  { %783 = vmatpush1.msra.mxu0 %v736_v19  ;;  %678 = vmatprep.mubr.f32.mxu1 %v3226_v0  ;;  %v1302_v16 = vld [vmem:[#allocation5 + $0x1a0] sm:$0xff]  ;;  %v1267_v19 = vld [vmem:[#allocation5 + $0x90] sm:$0xff] }
  0x61   :  { %784 = vmatprep.subr.mxu0 %v735_v20  ;;  %2759 = vmatmul.mubr.msk.f32.gmra.mxu0 %vm131_vm2, %v381_v21  ;;  %v1300_v20 = vld [vmem:[#allocation5 + $0x190] sm:$0xff]  ;;  %v1266_v21 = vld [vmem:[#allocation5 + $0x88] sm:$0xff] }
  0x62   :  { %785 = vmatpush1.msra.mxu0 %v734_v23  ;;  %515 = vmatprep.mubr.f32.mxu0 %v3226_v0  ;;  %v1265_v23 = vld [vmem:[#allocation5 + $0x80] sm:$0xff] }
  0x63   :  { %2767 = vmatmul.mubr.msk.f32.gmra.mxu1 %vm131_vm2, %v550_v24  ;;  %786 = vmatprep.subr.mxu0 %v733_v25  ;;  %v1298_v24 = vld [vmem:[#allocation5 + $0x180] sm:$0xff]  ;;  %v1264_v25 = vld [vmem:[#allocation5 + $0x78] sm:$0xff] }
  0x64   :  { %787 = vmatpush1.msra.mxu0 %v732_v28  ;;  %684 = vmatprep.mubr.f32.mxu1 %v3226_v0  ;;  %v1263_v28 = vld [vmem:[#allocation5 + $0x70] sm:$0xff] }
  0x65   :  { %2760 = vmatmul.mubr.msk.f32.gmra.mxu0 %vm131_vm2, %v383_v29  ;;  %788 = vmatprep.subr.mxu0 %v731_v30  ;;  %v1296_v29 = vld [vmem:[#allocation5 + $0x170] sm:$0xff]  ;;  %v1262_v30 = vld [vmem:[#allocation5 + $0x68] sm:$0xff] }
  0x66   :  { %789 = vmatpush1.msra.mxu0 %v730_v32  ;;  %521 = vmatprep.mubr.f32.mxu0 %v3226_v0  ;;  %v1261_v32 = vld [vmem:[#allocation5 + $0x60] sm:$0xff] }
  0x67   :  { %2768 = vmatmul.mubr.msk.f32.gmra.mxu1 %vm131_vm2, %v552_v33  ;;  %790 = vmatprep.subr.mxu0 %v729_v34  ;;  %v1294_v33 = vld [vmem:[#allocation5 + $0x160] sm:$0xff]  ;;  %v1260_v34 = vld [vmem:[#allocation5 + $0x58] sm:$0xff] }
  0x68   :  { %791 = vmatpush1.msra.mxu0 %v728_v37  ;;  %690 = vmatprep.mubr.f32.mxu1 %v3226_v0  ;;  %v1259_v37 = vld [vmem:[#allocation5 + $0x50] sm:$0xff] }
  0x69   :  { %2761 = vmatmul.mubr.msk.f32.gmra.mxu0 %vm131_vm2, %v385_v39  ;;  %792 = vmatprep.subr.mxu0 %v727_v40  ;;  %v1292_v39 = vld [vmem:[#allocation5 + $0x150] sm:$0xff]  ;;  %v1258_v40 = vld [vmem:[#allocation5 + $0x48] sm:$0xff] }
  0x6a   :  { %793 = vmatpush1.msra.mxu0 %v726_v43  ;;  %828 = vmatprep.mubr.f32.mxu0 %v3226_v0  ;;  %v1290_v43 = vld [vmem:[#allocation5 + $0x140] sm:$0xff] }
  0x6b   :  { %2769 = vmatmul.mubr.msk.f32.gmra.mxu1 %vm131_vm2, %v554_v44  ;;  %794 = vmatprep.subr.mxu0 %v725_v46  ;;  %v1256_v44 = vld [vmem:[#allocation5 + $0x38] sm:$0xff] }
  0x6c   :  { %795 = vmatpush1.msra.mxu0 %v724_v47  ;;  %1481 = vmatprep.mubr.f32.mxu1 %v3226_v0  ;;  %v1289_v46 = vld [vmem:[#allocation5 + $0x138] sm:$0xff]  ;;  %v1255_v47 = vld [vmem:[#allocation5 + $0x30] sm:$0xff] }
  0x6d   :  { %2772 = vmatmul.mubr.msk.f32.vlgmr.msra.gmra.mxu0 %vm131_vm2, %v711_v35  ;;  %1520 = vmatprep.subr.mxu0 %v1280_v3  ;;  %v1288_v35 = vld [vmem:[#allocation5 + $0x130] sm:$0xff]  ;;  %v1282_v3 = vld [vmem:[#allocation5 + $0x100] sm:$0xff] }
  0x6e   :  { %834 = vmatprep.mubr.f32.mxu0 %v3226_v0  ;;  %1417 = vmatprep.subr.mxu1 %v1313_v15  ;;  %v1769_v15 = vld [vmem:[#allocation5 + $0x3f8] sm:$0xff] }
  0x6f   :  { %1521 = vmatpush1.msra.mxu0 %v1279_v56  ;;  %1418 = vmatpush1.msra.mxu1 %v1312_v57  ;;  %v1629_v56 = vld [vmem:[#allocation5 + $0x2f8] sm:$0xff] }
  0x70   :  { %1522 = vmatprep.subr.mxu0 %v1278_v58  ;;  %1419 = vmatprep.subr.mxu1 %v1311_v26 }
  0x71   :  { %2773 = vmatmul.mubr.msk.f32.gmra.mxu0 %vm131_vm2, %v713_v48  ;;  %1420 = vmatpush1.msra.mxu1 %v1310_v60  ;;  %v1287_v48 = vld [vmem:[#allocation5 + $0x128] sm:$0xff] }
  0x72   :  { %840 = vmatprep.mubr.f32.mxu0 %v3226_v0  ;;  %1523 = vmatpush1.msra.mxu0 %v1277_v59 }
  0x73   :  { %1524 = vmatprep.subr.mxu0 %v1276_v61  ;;  %1421 = vmatprep.subr.mxu1 %v1309_v62 }
  0x74   :  { %1525 = vmatpush1.msra.mxu0 %v1275_v63  ;;  %1422 = vmatpush1.msra.mxu1 %v1308_v1 }
  0x75   :  { %2774 = vmatmul.mubr.msk.f32.gmra.mxu0 %vm131_vm2, %v715_v45  ;;  %1526 = vmatprep.subr.mxu0 %v1274_v4  ;;  %v1286_v45 = vld [vmem:[#allocation5 + $0x120] sm:$0xff] }
  0x76   :  { %846 = vmatprep.mubr.f32.mxu0 %v3226_v0  ;;  %1423 = vmatprep.subr.mxu1 %v1307_v5 }
  0x77   :  { %1527 = vmatpush1.msra.mxu0 %v1273_v6  ;;  %1424 = vmatpush1.msra.mxu1 %v1306_v7 }
  0x78   :  { %1528 = vmatprep.subr.mxu0 %v1272_v8  ;;  %1425 = vmatprep.subr.mxu1 %v1305_v9 }
  0x79   :  { %2775 = vmatmul.mubr.msk.f32.gmra.mxu0 %vm131_vm2, %v718_v52  ;;  %1426 = vmatpush1.msra.mxu1 %v1304_v11  ;;  %v1251_v52 = vld [vmem:[#allocation5 + $0x10] sm:$0xff] }
  0x7a   :  { %852 = vmatprep.mubr.f32.mxu0 %v3226_v0  ;;  %1529 = vmatpush1.msra.mxu0 %v1271_v10 }
  0x7b   :  { %1530 = vmatprep.subr.mxu0 %v1270_v12  ;;  %1427 = vmatprep.subr.mxu1 %v1303_v13 }
  0x7c   :  { %1531 = vmatpush1.msra.mxu0 %v1269_v14  ;;  %1428 = vmatpush1.msra.mxu1 %v1302_v16 }
  0x7d   :  { %2776 = vmatmul.mubr.msk.f32.gmra.mxu0 %vm131_vm2, %v720_v54  ;;  %1532 = vmatprep.subr.mxu0 %v1268_v17  ;;  %v1250_v54 = vld [vmem:[#allocation5 + $0x8] sm:$0xff] }
  0x7e   :  { %858 = vmatprep.mubr.f32.mxu0 %v3226_v0  ;;  %1429 = vmatprep.subr.mxu1 %v1301_v18 }
  0x7f   :  { %1533 = vmatpush1.msra.mxu0 %v1267_v19  ;;  %1430 = vmatpush1.msra.mxu1 %v1300_v20 }
  0x80   :  { %1534 = vmatprep.subr.mxu0 %v1266_v21  ;;  %1431 = vmatprep.subr.mxu1 %v1299_v22 }
  0x81   :  { %2777 = vmatmul.mubr.msk.f32.gmra.mxu0 %vm131_vm2, %v722_v2  ;;  %1432 = vmatpush1.msra.mxu1 %v1298_v24  ;;  %v1249_v2 = vld [vmem:[#allocation5] sm:$0xff] }
  0x82   :  { %1584 = vmatprep.mubr.f32.mxu0 %v3226_v0  ;;  %1535 = vmatpush1.msra.mxu0 %v1265_v23 }
  0x83   :  { %1536 = vmatprep.subr.mxu0 %v1264_v25  ;;  %1433 = vmatprep.subr.mxu1 %v1297_v27 }
  0x84   :  { %1537 = vmatpush1.msra.mxu0 %v1263_v28  ;;  %1434 = vmatpush1.msra.mxu1 %v1296_v29  ;;  %v879_v29 = vlaneseq }
  0x85   :  { %1538 = vmatprep.subr.mxu0 %v1262_v30  ;;  %1435 = vmatprep.subr.mxu1 %v1295_v31 }
  0x86   :  { %1539 = vmatpush1.msra.mxu0 %v1261_v32  ;;  %1436 = vmatpush1.msra.mxu1 %v1294_v33  ;;  %v3478_v33 = vshrl.u32 %v879_v29, 7 }
  0x87   :  { %1540 = vmatprep.subr.mxu0 %v1260_v34  ;;  %1437 = vmatprep.subr.mxu1 %v1293_v36 }
  0x88   :  { %1541 = vmatpush1.msra.mxu0 %v1259_v37  ;;  %1438 = vmatpush1.msra.mxu1 %v1292_v39 }
  0x89   :  { %1542 = vmatprep.subr.mxu0 %v1258_v40  ;;  %1439 = vmatprep.subr.mxu1 %v1291_v41 }
  0x8a   :  { %1543 = vmatpush1.msra.mxu0 %v1257_v42  ;;  %1440 = vmatpush1.msra.mxu1 %v1290_v43  ;;  %v3485_v42 = vsub.s32 0, %v3478_v33 }
  0x8b   :  { %1544 = vmatprep.subr.mxu0 %v1256_v44  ;;  %1441 = vmatprep.subr.mxu1 %v1289_v46  ;;  %v877_v46 = vld [vmem:[%s4220_s6] ss:$8 sm:$0x3] }
  0x8c   :  { %1545 = vmatpush1.msra.mxu0 %v1255_v47  ;;  %1442 = vmatpush1.msra.mxu1 %v1288_v35 }
  0x8d   :  { %1546 = vmatprep.subr.mxu0 %v1254_v38  ;;  %1443 = vmatprep.subr.mxu1 %v1287_v48  ;;  %v885_v38 = vsub.s32 1, %v3478_v33 }
  0x8e   :  { %1547 = vmatpush1.msra.mxu0 %v1253_v49  ;;  %1444 = vmatpush1.msra.mxu1 %v1286_v45  ;;  %v3227_v49 = vmov 1983009808  }
  0x8f   :  { %1548 = vmatprep.subr.mxu0 %v1252_v50  ;;  %1445 = vmatprep.subr.mxu1 %v1285_v51  ;;  %v928_v45 = vunpack.c.l.s4 %v3227_v49 }
  0x90   :  { %1549 = vmatpush1.msra.mxu0 %v1251_v52  ;;  %1446 = vmatpush1.msra.mxu1 %v1284_v53  ;;  %v3496_v53 = vrot.slane %v877_v46, %v3485_v42 }
  0x91   :  { %1550 = vmatprep.subr.mxu0 %v1250_v54  ;;  %1447 = vmatprep.subr.mxu1 %v1283_v55 }
  0x92   :  { %1551 = vmatpush1.msra.mxu0 %v1249_v2  ;;  %1448 = vmatpush1.msra.mxu1 %v1282_v3 }
  0x93   :  { %1796 = vmatprep.subr.mxu0 %v1769_v15  ;;  %1656 = vmatprep.subr.mxu1 %v1629_v56  ;;  %v3500_v56 = vrot.slane %v877_v46, %v885_v38 }
  0xf4   :  { %v217_v57 = vpop.f32.mrf.mxu0  ;;  %v336_v58 = vpop.f32.mrf.mxu1 }
  0xf5   :  { %v337_v37 = vadd.f32 %v336_v58, %v217_v57  ;;  %v929_v58 = vunpack.c.0.s8 %v928_v45 }
  0xf6   :  { %v219_v26 = vpop.f32.mrf.mxu0  ;;  %v338_v59 = vpop.f32.mrf.mxu1 }
  0xf7   :  { %v339_v40 = vadd.f32 %v338_v59, %v219_v26 }
  0xf8   :  { %v223_v60 = vpop.f32.mrf.mxu0  ;;  %v342_v61 = vpop.f32.mrf.mxu1 }
  0xf9   :  { %v343_v47 = vadd.f32 %v342_v61, %v223_v60 }
  0xfa   :  { %v225_v62 = vpop.f32.mrf.mxu0  ;;  %v344_v63 = vpop.f32.mrf.mxu1 }
  0xfb   :  { %v345_v50 = vadd.f32 %v344_v63, %v225_v62 }
  0xfd   :  { %v229_v1 = vpop.f32.mrf.mxu0 }
  0xfe   :  { %v348_v4 = vpop.f32.mrf.mxu1 }
  0xff   :  { %v231_v5 = vpop.f32.mrf.mxu0  ;;  %v349_v62 = vadd.f32 %v348_v4, %v229_v1 }
 0x100   :  { %v350_v6 = vpop.f32.mrf.mxu1 }
 0x101   :  { %v351_v26 = vadd.f32 %v350_v6, %v231_v5 }
 0x103   :  { %v3450_v7 = vpop.f32.mrf.mxu0 }
 0x104   :  { %v3452_v8 = vpop.f32.mrf.mxu1 }
 0x105   :  { %v3454_v9 = vpop.f32.mrf.mxu0 }
 0x106   :  { %v3456_v10 = vpop.f32.mrf.mxu1 }
 0x109   :  { %v3458_v11 = vpop.f32.mrf.mxu0  ;;  %v3460_v12 = vpop.f32.mrf.mxu1 }
 0x10b   :  { %v3462_v13 = vpop.f32.mrf.mxu0  ;;  %v3464_v14 = vpop.f32.mrf.mxu1 }
 0x10f   :  { %v3466_v16 = vpop.f32.mrf.mxu0  ;;  %v3470_v18 = vpop.f32.mrf.mxu1 }
 0x111   :  { %v3468_v17 = vpop.f32.mrf.mxu0  ;;  %v3472_v21 = vpop.f32.mrf.mxu1 }
 0x114   :  { %v493_v19 = vpop.f32.mrf.mxu0 }
 0x115   :  { %v528_v41 = vadd.f32 %v493_v19, %v337_v37 }
 0x116   :  { %v495_v20 = vpop.f32.mrf.mxu0 }
 0x117   :  { %v662_v22 = vpop.f32.mrf.mxu1  ;;  %v529_v35 = vadd.f32 %v495_v20, %v339_v40 }
 0x118   :  { %v697_v51 = vadd.f32 %v662_v22, %v528_v41  ;;  %v3505_v41 = vsub.s32 %v929_v58, %v3478_v33 }
 0x119   :  { %v499_v23 = vpop.f32.mrf.mxu0  ;;  %v664_v25 = vpop.f32.mrf.mxu1 }
 0x11a   :  { %v530_v52 = vadd.f32 %v499_v23, %v343_v47  ;;  %v698_v2 = vadd.f32 %v664_v25, %v529_v35 }
 0x11b   :  { %v501_v24 = vpop.f32.mrf.mxu0  ;;  %v668_v30 = vpop.f32.mrf.mxu1 }
 0x11c   :  { %v531_v3 = vadd.f32 %v501_v24, %v345_v50  ;;  %v699_v59 = vadd.f32 %v668_v30, %v530_v52 }
 0x11d   :  { %v505_v27 = vpop.f32.mrf.mxu0  ;;  %v670_v34 = vpop.f32.mrf.mxu1 }
 0x11e   :  { %v700_v20 = vadd.f32 %v670_v34, %v531_v3  ;;  %v532_v25 = vadd.f32 %v505_v27, %v349_v62  ;;  %v355_v34 = vadd.f32 %v3452_v8, %v3450_v7  ;;  %v357_v27 = vadd.f32 %v3456_v10, %v3454_v9 }
 0x11f   :  { %v507_v28 = vpop.f32.mrf.mxu0  ;;  %v674_v43 = vpop.f32.mrf.mxu1 }
 0x120   :  { %v533_v22 = vadd.f32 %v507_v28, %v351_v26  ;;  %v701_v35 = vadd.f32 %v674_v43, %v532_v25 }
 0x121   :  { %v3474_v31 = vpop.f32.mrf.mxu0  ;;  %v676_v54 = vpop.f32.mrf.mxu1 }
 0x122   :  { %v702_v1 = vadd.f32 %v676_v54, %v533_v22  ;;  %v361_v54 = vadd.f32 %v3460_v12, %v3458_v11 }
 0x123   :  { %v3476_v32 = vpop.f32.mrf.mxu0  ;;  %v680_v63 = vpop.f32.mrf.mxu1 }
 0x124   :  { %v535_v22 = vadd.f32 %v3476_v32, %v357_v27 }
 0x125   :  { %v3480_v36 = vpop.f32.mrf.mxu0  ;;  %v682_v6 = vpop.f32.mrf.mxu1 }
 0x126   :  { %v536_v32 = vadd.f32 %v3480_v36, %v361_v54 }
 0x127   :  { %v3482_v39 = vpop.f32.mrf.mxu0 }
 0x129   :  { %v3487_v44 = vpop.f32.mrf.mxu0 }
 0x12b   :  { %v3493_v48 = vpop.f32.mrf.mxu0 }
 0x12d   :  { %v830_v55 = vpop.f32.mrf.mxu0 }
 0x12e   :  { %v865_v15 = vadd.f32 %v830_v55, %v697_v51  ;;  %v363_v55 = vadd.f32 %v3464_v14, %v3462_v13  ;;  %v367_v13 = vadd.f32 %v3470_v18, %v3466_v16  ;;  %v369_v14 = vadd.f32 %v3472_v21, %v3468_v17 }
 0x12f   :  { %v832_v57 = vpop.f32.mrf.mxu0 }
 0x130   :  { %v889_v60 = vadd.f32 %v3496_v53, %v865_v15  ;;  %v866_v61 = vadd.f32 %v832_v57, %v698_v2  ;;  %v686_v2 = vpop.f32.mrf.mxu1  ;;  %v534_v57 = vadd.f32 %v3474_v31, %v355_v34 }
 0x131   :  { %v836_v19 = vpop.f32.mrf.mxu0 }
 0x132   :  { %v890_v23 = vadd.f32 %v3500_v56, %v866_v61  ;;  %v867_v24 = vadd.f32 %v836_v19, %v699_v59  ;;  %v901_v37 = vmax.f32 %v889_v60, 0.0  ;;  %v688_v19 = vpop.f32.mrf.mxu1  ;;  %v703_v16 = vadd.f32 %v680_v63, %v534_v57 }
 0x133   :  { %v838_v29 = vpop.f32.mrf.mxu0 }
 0x134   :  { %v902_v40 = vmax.f32 %v890_v23, 0.0  ;;  %v868_v5 = vadd.f32 %v838_v29, %v700_v20  ;;  %v891_v30 = vadd.f32 %v3496_v53, %v867_v24  ;;  %v692_v21 = vpop.f32.mrf.mxu1 }
 0x135   :  { %v842_v46 = vpop.f32.mrf.mxu0 }
 0x136   :  { %v925_v4 = vcombine.low %v901_v37, %v902_v40  ;;  %v926_v47 = vcombine.high %v901_v37, %v902_v40  ;;  %v892_v28 = vadd.f32 %v3500_v56, %v868_v5  ;;  %v903_v3 = vmax.f32 %v891_v30, 0.0 }
 0x137   :  { %v844_v49 = vpop.f32.mrf.mxu0  ;;  %v869_v7 = vadd.f32 %v842_v46, %v701_v35 }
 0x138   :  { %v933_v45 = vrot.slane %v925_v4, %v3505_v41  ;;  %v940_v50 = vrot.slane %v926_v47, %v3505_v41  ;;  %v904_v51 = vmax.f32 %v892_v28, 0.0  ;;  %v870_v52 = vadd.f32 %v844_v49, %v702_v1 }
 0x139   :  { %v848_v8 = vpop.f32.mrf.mxu0  ;;  %v893_v25 = vadd.f32 %v3496_v53, %v869_v7  ;;  %v704_v49 = vadd.f32 %v682_v6, %v535_v22 }
 0x13a   :  { %v941_v15 = vcombine.high %v933_v45, %v933_v45  ;;  %v942_v9 = vcombine.high %v940_v50, %v940_v50  ;;  %v2778_v10 = vrot.slane %v933_v45, 9  ;;  %v2780_v43 = vrot.slane %v940_v50, 9 }
 0x13b   :  { %v943_v58 = vcombine.low %v903_v3, %v904_v51  ;;  %v944_v26 = vcombine.high %v903_v3, %v904_v51  ;;  %v894_v59 = vadd.f32 %v3500_v56, %v870_v52  ;;  %v850_v60 = vpop.f32.mrf.mxu0  ;;  %v905_v35 = vmax.f32 %v893_v25, 0.0 }
 0x13c   :  { %v2779_v61 = vrot.slane %v941_v15, 9  ;;  %v2781_v11 = vrot.slane %v942_v9, 9  ;;  %v1129_v12 = vmax.f32 %v933_v45, %v2778_v10  ;;  %v1131_v62 = vmax.f32 %v940_v50, %v2780_v43 }
 0x13d   :  { %v951_v20 = vrot.slane %v943_v58, %v3505_v41  ;;  %v958_v31 = vrot.slane %v944_v26, %v3505_v41  ;;  %v854_v30 = vpop.f32.mrf.mxu0  ;;  %v906_v17 = vmax.f32 %v894_v59, 0.0  ;;  %v537_v45 = vadd.f32 %v3482_v39, %v363_v55 }
 0x13e   :  { %v1130_v23 = vmax.f32 %v941_v15, %v2779_v61  ;;  %v1132_v24 = vmax.f32 %v942_v9, %v2781_v11  ;;  %v1177_v18 = vrot.slane %v1129_v12, 2  ;;  %v1179_v46 = vrot.slane %v1131_v62, 2  ;;  %v694_v9 = vpop.f32.mrf.mxu1 }
 0x13f   :  { %v959_v29 = vcombine.high %v951_v20, %v951_v20  ;;  %v960_v37 = vcombine.high %v958_v31, %v958_v31  ;;  %v2782_v40 = vrot.slane %v951_v20, 9  ;;  %v2784_v5 = vrot.slane %v958_v31, 9  ;;  %v856_v63 = vpop.f32.mrf.mxu0 }
 0x140   :  { %v1178_v1 = vrot.slane %v1130_v23, 2  ;;  %v1180_v4 = vrot.slane %v1132_v24, 2  ;;  %v538_v50 = vadd.f32 %v3487_v44, %v367_v13  ;;  %v871_v51 = vadd.f32 %v848_v8, %v703_v16 }
 0x141   :  { %v2783_v47 = vrot.slane %v959_v29, 9  ;;  %v2785_v28 = vrot.slane %v960_v37, 9  ;;  %v1133_v34 = vmax.f32 %v951_v20, %v2782_v40  ;;  %v1135_v27 = vmax.f32 %v958_v31, %v2784_v5 }
 0x142   :  { %v539_v52 = vadd.f32 %v3493_v48, %v369_v14  ;;  %v961_v15 = vcombine.low %v905_v35, %v906_v17  ;;  %v3533_v10 = vmax.f32 %v1129_v12, %v1177_v18  ;;  %v1226_v43 = vmax.f32 %v1130_v23, %v1178_v1  ;;  %v860_v48 = vpop.f32.mrf.mxu0 }
 0x143   :  { %v1134_v3 = vmax.f32 %v959_v29, %v2783_v47  ;;  %v1136_v7 = vmax.f32 %v960_v37, %v2785_v28  ;;  %v1227_v36 = vmax.f32 %v1131_v62, %v1179_v46  ;;  %v1228_v54 = vmax.f32 %v1132_v24, %v1180_v4 }
 0x144   :  { %v1181_v57 = vrot.slane %v1133_v34, 2  ;;  %v1183_v58 = vrot.slane %v1135_v27, 2  ;;  %v969_v6 = vrot.slane %v961_v15, %v3505_v41  ;;  %v872_v39 = vadd.f32 %v850_v60, %v704_v49  ;;  %v862_v29 = vpop.f32.mrf.mxu0 }
 0x145   :  { %v705_v55 = vadd.f32 %v686_v2, %v536_v32  ;;  %v706_v44 = vadd.f32 %v688_v19, %v537_v45  ;;  %v707_v8 = vadd.f32 %v692_v21, %v538_v50  ;;  %v895_v26 = vadd.f32 %v3496_v53, %v871_v51 }
 0x146   :  { %v708_v59 = vadd.f32 %v694_v9, %v539_v52  ;;  %v1182_v61 = vrot.slane %v1134_v3, 2  ;;  %v1184_v11 = vrot.slane %v1136_v7, 2  ;;  %v962_v13 = vcombine.high %v905_v35, %v906_v17 }
 0x147   :  { %v3538_v12 = vrot.slane %v1226_v43, %v3485_v42  ;;  %v3541_v62 = vrot.slane %v1227_v36, %v3485_v42  ;;  %v1499_v14 = vrot.slane %v3533_v10, %v3485_v42  ;;  %v896_v2 = vadd.f32 %v3500_v56, %v872_v39 }
 0x148   :  { %v3547_v60 = vrot.slane %v1228_v54, %v3485_v42  ;;  %v1229_v19 = vmax.f32 %v1133_v34, %v1181_v57  ;;  %v1231_v20 = vmax.f32 %v1135_v27, %v1183_v58  ;;  %v2786_v31 = vrot.slane %v969_v6, 9 }
 0x149   :  { %v907_v22 = vmax.f32 %v895_v26, 0.0  ;;  %v908_v23 = vmax.f32 %v896_v2, 0.0  ;;  %v873_v24 = vadd.f32 %v854_v30, %v705_v55  ;;  %v874_v25 = vadd.f32 %v856_v63, %v706_v44 }
 0x14a   :  { %v3549_v37 = vmax.f32 %v1134_v3, %v1182_v61  ;;  %v3551_v40 = vmax.f32 %v1136_v7, %v1184_v11  ;;  %v3554_v5 = vrot.slane %v962_v13, %v3505_v41  ;;  %v875_v16 = vadd.f32 %v860_v48, %v707_v8 }
 0x14b   :  { %v979_v18 = vcombine.low %v907_v22, %v908_v23  ;;  %v980_v46 = vcombine.high %v907_v22, %v908_v23  ;;  %v897_v17 = vadd.f32 %v3496_v53, %v873_v24  ;;  %v898_v21 = vadd.f32 %v3500_v56, %v874_v25 }
 0x14c   :  { %v3559_v1 = vrot.slane %v1229_v19, %v3485_v42  ;;  %v3562_v30 = vrot.slane %v1231_v20, %v3485_v42  ;;  %v1137_v4 = vmax.f32 %v969_v6, %v2786_v31  ;;  %v876_v47 = vadd.f32 %v862_v29, %v708_v59 }
 0x14d   :  { %v3564_v28 = vcombine.high %v969_v6, %v969_v6  ;;  %v987_v32 = vrot.slane %v979_v18, %v3505_v41  ;;  %v994_v34 = vrot.slane %v980_v46, %v3505_v41  ;;  %v910_v27 = vmax.f32 %v898_v21, 0.0 }
 0x14e   :  { %v3570_v35 = vcombine.high %v3554_v5, %v3554_v5  ;;  %v909_v49 = vmax.f32 %v897_v17, 0.0  ;;  %v899_v45 = vadd.f32 %v3496_v53, %v875_v16  ;;  %v900_v50 = vadd.f32 %v3500_v56, %v876_v47 }
 0x14f   :  { %v995_v51 = vcombine.high %v987_v32, %v987_v32  ;;  %v996_v63 = vcombine.high %v994_v34, %v994_v34  ;;  %v2790_v52 = vrot.slane %v987_v32, 9  ;;  %v2792_v3 = vrot.slane %v994_v34, 9 }
 0x150   :  { %v1185_v7 = vrot.slane %v1137_v4, 2  ;;  %v997_v15 = vcombine.low %v909_v49, %v910_v27  ;;  %v998_v9 = vcombine.high %v909_v49, %v910_v27  ;;  %v912_v43 = vmax.f32 %v900_v50, 0.0 }
 0x151   :  { %v2791_v36 = vrot.slane %v995_v51, 9  ;;  %v2793_v54 = vrot.slane %v996_v63, 9  ;;  %v1141_v57 = vmax.f32 %v987_v32, %v2790_v52  ;;  %v1143_v58 = vmax.f32 %v994_v34, %v2792_v3 }
 0x152   :  { %v2788_v6 = vrot.slane %v3554_v5, 9  ;;  %v1005_v39 = vrot.slane %v997_v15, %v3505_v41  ;;  %v1012_v53 = vrot.slane %v998_v9, %v3505_v41  ;;  %v911_v56 = vmax.f32 %v899_v45, 0.0 }
 0x153   :  { %v1142_v55 = vmax.f32 %v995_v51, %v2791_v36  ;;  %v1144_v44 = vmax.f32 %v996_v63, %v2793_v54  ;;  %v1189_v8 = vrot.slane %v1141_v57, 2  ;;  %v1191_v26 = vrot.slane %v1143_v58, 2 }
 0x154   :  { %v1013_v48 = vcombine.high %v1005_v39, %v1005_v39  ;;  %v1014_v59 = vcombine.high %v1012_v53, %v1012_v53  ;;  %v2794_v61 = vrot.slane %v1005_v39, 9  ;;  %v2796_v11 = vrot.slane %v1012_v53, 9 }
 0x155   :  { %v1233_v13 = vmax.f32 %v1137_v4, %v1185_v7  ;;  %v1190_v2 = vrot.slane %v1142_v55, 2  ;;  %v1192_v19 = vrot.slane %v1144_v44, 2  ;;  %v1015_v20 = vcombine.low %v911_v56, %v912_v43 }
 0x156   :  { %v2795_v31 = vrot.slane %v1013_v48, 9  ;;  %v2797_v22 = vrot.slane %v1014_v59, 9  ;;  %v1145_v23 = vmax.f32 %v1005_v39, %v2794_v61  ;;  %v1504_v24 = vsel %vm1394_vm5, %v3538_v12, %v1499_v14 }
 0x157   :  { %v1237_v25 = vmax.f32 %v1141_v57, %v1189_v8  ;;  %v1238_v29 = vmax.f32 %v1142_v55, %v1190_v2  ;;  %v1239_v16 = vmax.f32 %v1143_v58, %v1191_v26  ;;  %v1016_v18 = vcombine.high %v911_v56, %v912_v43  ;;  %v1768_v8 = vld [vmem:[#allocation5 + $0x3f0] sm:$0xff]  ;;  %v1767_v2 = vld [vmem:[#allocation5 + $0x3e8] sm:$0xff] }
 0x158   :  { %v1240_v46 = vmax.f32 %v1144_v44, %v1192_v19  ;;  %v1146_v17 = vmax.f32 %v1013_v48, %v2795_v31  ;;  %v1147_v21 = vmax.f32 %v1012_v53, %v2796_v11  ;;  %v1193_v4 = vrot.slane %v1145_v23, 2 }
 0x159   :  { %v3584_v47 = vrot.slane %v3549_v37, %v3485_v42  ;;  %v3588_v32 = vrot.slane %v3551_v40, %v3485_v42  ;;  %v1148_v10 = vmax.f32 %v1014_v59, %v2797_v22  ;;  %v1023_v34 = vrot.slane %v1015_v20, %v3505_v41 }
 0x15a   :  { %v2787_v14 = vrot.slane %v3564_v28, 9  ;;  %v1194_v27 = vrot.slane %v1146_v17, 2  ;;  %v1505_v49 = vsel %vm1396_vm6, %v3541_v62, %v1504_v24  ;;  %v3595_v45 = vrot.slane %v1233_v13, %v3485_v42  ;;  %v1766_v24 = vld [vmem:[#allocation5 + $0x3e0] sm:$0xff] }
 0x15b   :  { %v1365_v50 = vrot.slane %v1238_v29, %v3485_v42  ;;  %v3599_v37 = vrot.slane %v1239_v16, %v3485_v42  ;;  %v1241_v51 = vmax.f32 %v1145_v23, %v1193_v4  ;;  %v2798_v40 = vrot.slane %v1023_v34, 9  ;;  %v1628_v23 = vld [vmem:[#allocation5 + $0x2f0] sm:$0xff] }
 0x15c   :  { %v3602_v63 = vrot.slane %v1240_v46, %v3485_v42  ;;  %v1503_v52 = vrot.slane %v1237_v25, %v3485_v42  ;;  %v1195_v3 = vrot.slane %v1147_v21, 2  ;;  %v3606_v7 = vrot.slane %v1016_v18, %v3505_v41  ;;  %v1627_v18 = vld [vmem:[#allocation5 + $0x2e8] sm:$0xff]  ;;  %v1765_v46 = vld [vmem:[#allocation5 + $0x3d8] sm:$0xff]  ;;  %v1764_v4 = vld [vmem:[#allocation5 + $0x3d0] sm:$0xff] }
 0x15d   :  { %v1196_v15 = vrot.slane %v1148_v10, 2  ;;  %v1242_v9 = vmax.f32 %v1146_v17, %v1194_v27  ;;  %v1506_v43 = vsel %vm1398_vm7, %v3547_v60, %v1505_v49  ;;  %v1395_v36 = vsel %vm1394_vm5, %v3541_v62, %v3538_v12 }
 0x15e   :  { %v3613_v54 = vcombine.high %v1023_v34, %v1023_v34  ;;  %v1149_v57 = vmax.f32 %v1023_v34, %v2798_v40  ;;  %v1507_v58 = vsel %vm1400_vm8, %v3559_v1, %v1506_v43  ;;  %v1397_v39 = vsel %vm1396_vm6, %v3547_v60, %v1395_v36 }
 0x15f   :  { %v3620_v53 = vrot.slane %v1241_v51, %v3485_v42  ;;  %v1508_v56 = vsel %vm1402_vm9, %v3584_v47, %v1507_v58  ;;  %v1399_v55 = vsel %vm1398_vm7, %v3559_v1, %v1397_v39  ;;  %v1511_v12 = vsel %vm1394_vm5, %v1365_v50, %v1503_v52  ;;  %v1763_v51 = vld [vmem:[#allocation5 + $0x3c8] sm:$0xff]  ;;  %v1624_v52 = vld [vmem:[#allocation5 + $0x2d0] sm:$0xff]  ;;  %v1622_v39 = vld [vmem:[#allocation5 + $0x2c0] sm:$0xff] }
 0x160   :  { %v1509_v44 = vsel %vm1404_vm10, %v3562_v30, %v1508_v56  ;;  %v1401_v26 = vsel %vm1400_vm8, %v3584_v47, %v1399_v55  ;;  %v1512_v48 = vsel %vm1396_vm6, %v3599_v37, %v1511_v12  ;;  %v1408_v59 = vsel %vm1394_vm5, %v3599_v37, %v1365_v50  ;;  %v1625_v50 = vld [vmem:[#allocation5 + $0x2d8] sm:$0xff]  ;;  %v1760_v56 = vld [vmem:[#allocation5 + $0x3b0] sm:$0xff] }
 0x161   :  { %v3636_v61 = vrot.slane %v1242_v9, %v3485_v42  ;;  %v1510_v11 = vsel %vm1406_vm11, %v3588_v32, %v1509_v44  ;;  %v1403_v13 = vsel %vm1402_vm9, %v3562_v30, %v1401_v26  ;;  %v1513_v19 = vsel %vm1398_vm7, %v3602_v63, %v1512_v48  ;;  %v1759_v44 = vld [vmem:[#allocation5 + $0x3a8] sm:$0xff]  ;;  %v1620_v48 = vld [vmem:[#allocation5 + $0x2b0] sm:$0xff] }
 0x162   :  { %v1243_v20 = vmax.f32 %v1147_v21, %v1195_v3  ;;  %v1197_v31 = vrot.slane %v1149_v57, 2  ;;  %1585 = vmatmul.mubr.f32.vlgmr.msra.gmra.mxu0 %v1510_v11  ;;  %v1405_v22 = vsel %vm1404_vm10, %v3588_v32, %v1403_v13  ;;  %v1409_v25 = vsel %vm1396_vm6, %v3602_v63, %v1408_v59  ;;  %v1626_v21 = vld [vmem:[#allocation5 + $0x2e0] sm:$0xff] }
 0x163   :  { %v3651_v29 = vmax.f32 %v3554_v5, %v2788_v6  ;;  %1797 = vmatpush1.msra.mxu0 %v1768_v8  ;;  %v1407_v16 = vsel %vm1406_vm11, %v3595_v45, %v1405_v22  ;;  %1590 = vmatprep.mubr.f32.mxu0 %v3226_v0  ;;  %v1138_v17 = vmax.f32 %v3564_v28, %v2787_v14  ;;  %v2789_v6 = vrot.slane %v3570_v35, 9  ;;  %v1762_v3 = vld [vmem:[#allocation5 + $0x3c0] sm:$0xff] }
 0x164   :  { %1482 = vmatmul.mubr.f32.vlgmr.msra.gmra.mxu1 %v1407_v16  ;;  %1798 = vmatprep.subr.mxu0 %v1767_v2  ;;  %v1514_v34 = vsel %vm1400_vm8, %v3620_v53, %v1513_v19  ;;  %v1410_v5 = vsel %vm1398_vm7, %v3620_v53, %v1409_v25  ;;  %v1244_v27 = vmax.f32 %v1148_v10, %v1196_v15  ;;  %v2799_v49 = vrot.slane %v3613_v54, 9  ;;  %v1623_v10 = vld [vmem:[#allocation5 + $0x2c8] sm:$0xff]  ;;  %v1761_v15 = vld [vmem:[#allocation5 + $0x3b8] sm:$0xff]  ;;  %v1758_v59 = vld [vmem:[#allocation5 + $0x3a0] sm:$0xff] }
 0x165   :  { %1657 = vmatpush1.msra.mxu1 %v1628_v23  ;;  %1799 = vmatpush1.msra.mxu0 %v1766_v24  ;;  %v1411_v28 = vsel %vm1400_vm8, %v3636_v61, %v1410_v5  ;;  %v3666_v14 = vrot.slane %v1243_v20, %v3485_v42  ;;  %v2800_v40 = vrot.slane %v3606_v7, 9  ;;  %v1245_v9 = vmax.f32 %v1149_v57, %v1197_v31  ;;  %v1621_v57 = vld [vmem:[#allocation5 + $0x2b8] sm:$0xff]  ;;  %v1619_v19 = vld [vmem:[#allocation5 + $0x2a8] sm:$0xff]  ;;  %v1618_v22 = vld [vmem:[#allocation5 + $0x2a0] sm:$0xff] }
 0x166   :  { %1658 = vmatprep.subr.mxu1 %v1627_v18  ;;  %1800 = vmatprep.subr.mxu0 %v1765_v46  ;;  %v1515_v43 = vsel %vm1402_vm9, %v3636_v61, %v1514_v34  ;;  %v1186_v36 = vrot.slane %v1138_v17, 2  ;;  %v1187_v58 = vrot.slane %v3651_v29, 2  ;;  %v3675_v12 = vmax.f32 %v3570_v35, %v2789_v6  ;;  %v1757_v20 = vld [vmem:[#allocation5 + $0x398] sm:$0xff]  ;;  %v1756_v46 = vld [vmem:[#allocation5 + $0x390] sm:$0xff]  ;;  %v1755_v34 = vld [vmem:[#allocation5 + $0x388] sm:$0xff] }
 0x167   :  { %1659 = vmatpush1.msra.mxu1 %v1626_v21  ;;  %1801 = vmatpush1.msra.mxu0 %v1764_v4  ;;  %v1412_v55 = vsel %vm1402_vm9, %v3666_v14, %v1411_v28  ;;  %v3678_v8 = vrot.slane %v1244_v27, %v3485_v42  ;;  %v1150_v26 = vmax.f32 %v3613_v54, %v2799_v49  ;;  %v1617_v16 = vld [vmem:[#allocation5 + $0x298] sm:$0xff]  ;;  %v1615_v27 = vld [vmem:[#allocation5 + $0x288] sm:$0xff]  ;;  %v1754_v49 = vld [vmem:[#allocation5 + $0x380] sm:$0xff] }
 0x168   :  { %1660 = vmatprep.subr.mxu1 %v1625_v50  ;;  %1802 = vmatprep.subr.mxu0 %v1763_v51  ;;  %v1516_v11 = vsel %vm1404_vm10, %v3666_v14, %v1515_v43  ;;  %v3684_v13 = vrot.slane %v1245_v9, %v3485_v42  ;;  %v1151_v35 = vmax.f32 %v3606_v7, %v2800_v40  ;;  %v1614_v40 = vld [vmem:[#allocation5 + $0x280] sm:$0xff]  ;;  %v1613_v9 = vld [vmem:[#allocation5 + $0x278] sm:$0xff] }
 0x169   :  { %1661 = vmatpush1.msra.mxu1 %v1624_v52  ;;  %1803 = vmatpush1.msra.mxu0 %v1762_v3  ;;  %v1032_v2 = vcombine.high %v3606_v7, %v3606_v7  ;;  %v1413_v54 = vsel %vm1404_vm10, %v3678_v8, %v1412_v55  ;;  %v1780_v31 = vsel %vm1394_vm5, %v3559_v1, %v3547_v60  ;;  %v1198_v25 = vrot.slane %v1150_v26, 2  ;;  %v1753_v52 = vld [vmem:[#allocation5 + $0x378] sm:$0xff] }
 0x16a   :  { %1662 = vmatprep.subr.mxu1 %v1623_v10  ;;  %1804 = vmatprep.subr.mxu0 %v1761_v15  ;;  %v1234_v23 = vmax.f32 %v1138_v17, %v1186_v36  ;;  %v1235_v24 = vmax.f32 %v3651_v29, %v1187_v58  ;;  %v1517_v7 = vsel %vm1406_vm11, %v3678_v8, %v1516_v11  ;;  %v1199_v18 = vrot.slane %v1151_v35, 2  ;;  %v1616_v29 = vld [vmem:[#allocation5 + $0x290] sm:$0xff] }
 0x16b   :  { %1663 = vmatpush1.msra.mxu1 %v1622_v39  ;;  %1805 = vmatpush1.msra.mxu0 %v1760_v56  ;;  %v1414_v21 = vsel %vm1406_vm11, %v3684_v13, %v1413_v54  ;;  %v1781_v4 = vsel %vm1396_vm6, %v3584_v47, %v1780_v31  ;;  %v1188_v17 = vrot.slane %v3675_v12, 2  ;;  %v1640_v5 = vsel %vm1394_vm5, %v3547_v60, %v3541_v62  ;;  %v1752_v10 = vld [vmem:[#allocation5 + $0x370] sm:$0xff]  ;;  %v1751_v39 = vld [vmem:[#allocation5 + $0x368] sm:$0xff] }
 0x16c   :  { %1664 = vmatprep.subr.mxu1 %v1621_v57  ;;  %1806 = vmatprep.subr.mxu0 %v1759_v44  ;;  %v2801_v6 = vrot.slane %v1032_v2, 9  ;;  %v3707_v50 = vrot.slane %v1234_v23, %v3485_v42  ;;  %v3710_v51 = vrot.slane %v1235_v24, %v3485_v42  ;;  %v1246_v28 = vmax.f32 %v1150_v26, %v1198_v25  ;;  %v1612_v58 = vld [vmem:[#allocation5 + $0x270] sm:$0xff]  ;;  %v1750_v44 = vld [vmem:[#allocation5 + $0x360] sm:$0xff]  ;;  %v1747_v24 = vld [vmem:[#allocation5 + $0x348] sm:$0xff] }
 0x16d   :  { %1665 = vmatpush1.msra.mxu1 %v1620_v48  ;;  %1807 = vmatpush1.msra.mxu0 %v1758_v59  ;;  %v3714_v3 = vsel %vm1398_vm7, %v3562_v30, %v1781_v4  ;;  %v1247_v62 = vmax.f32 %v1151_v35, %v1199_v18  ;;  %v1920_v60 = vsel %vm1394_vm5, %v3584_v47, %v3559_v1  ;;  %v1608_v23 = vld [vmem:[#allocation5 + $0x250] sm:$0xff]  ;;  %v1607_v18 = vld [vmem:[#allocation5 + $0x248] sm:$0xff] }
 0x16e   :  { %1666 = vmatprep.subr.mxu1 %v1619_v19  ;;  %1808 = vmatprep.subr.mxu0 %v1757_v20  ;;  %v1641_v15 = vsel %vm1396_vm6, %v3559_v1, %v1640_v5  ;;  %v1787_v43 = vsel %vm1394_vm5, %v3620_v53, %v3602_v63  ;;  %v1236_v36 = vmax.f32 %v3675_v12, %v1188_v17  ;;  %v1611_v1 = vld [vmem:[#allocation5 + $0x268] sm:$0xff]  ;;  %v1609_v19 = vld [vmem:[#allocation5 + $0x258] sm:$0xff]  ;;  %v1748_v20 = vld [vmem:[#allocation5 + $0x350] sm:$0xff] }
 0x16f   :  { %1667 = vmatpush1.msra.mxu1 %v1618_v22  ;;  %1487 = vmatprep.mubr.f32.mxu1 %v3226_v0  ;;  %v1647_v56 = vsel %vm1394_vm5, %v3602_v63, %v3599_v37  ;;  %v1921_v55 = vsel %vm1396_vm6, %v3562_v30, %v1920_v60  ;;  %v1152_v57 = vmax.f32 %v1032_v2, %v2801_v6  ;;  %v1610_v37 = vld [vmem:[#allocation5 + $0x260] sm:$0xff]  ;;  %v1749_v63 = vld [vmem:[#allocation5 + $0x358] sm:$0xff] }
 0x170   :  { %1591 = vmatmul.mubr.f32.gmra.mxu0 %v1517_v7  ;;  %1668 = vmatprep.subr.mxu1 %v1617_v16  ;;  %v3731_v26 = vrot.slane %v1246_v28, %v3485_v42  ;;  %v1922_v12 = vsel %vm1398_vm7, %v3588_v32, %v1921_v55  ;;  %v1927_v48 = vsel %vm1394_vm5, %v3636_v61, %v3620_v53  ;;  %v1739_v55 = vld [vmem:[#allocation5 + $0x308] sm:$0xff] }
 0x171   :  { %1809 = vmatpush1.msra.mxu0 %v1756_v46  ;;  %1488 = vmatmul.mubr.f32.gmra.mxu1 %v1414_v21  ;;  %v3739_v59 = vrot.slane %v1247_v62, %v3485_v42  ;;  %v1923_v11 = vsel %vm1400_vm8, %v3595_v45, %v1922_v12  ;;  %v1200_v35 = vrot.slane %v1152_v57, 2  ;;  %v1928_v2 = vsel %vm1396_vm6, %v3666_v14, %v1927_v48  ;;  %v1746_v46 = vld [vmem:[#allocation5 + $0x340] sm:$0xff] }
 0x172   :  { %1669 = vmatpush1.msra.mxu1 %v1616_v29  ;;  %1810 = vmatprep.subr.mxu0 %v1755_v34  ;;  %v1915_v54 = vrot.slane %v1236_v36, %v3485_v42  ;;  %v1924_v31 = vsel %vm1402_vm9, %v3707_v50, %v1923_v11  ;;  %v1929_v22 = vsel %vm1398_vm7, %v3678_v8, %v1928_v2  ;;  %v1606_v29 = vld [vmem:[#allocation5 + $0x240] sm:$0xff]  ;;  %v1745_v34 = vld [vmem:[#allocation5 + $0x338] sm:$0xff]  ;;  %v1908_v2 = vld [vmem:[#allocation5 + $0x4f0] sm:$0xff] }
 0x173   :  { %1670 = vmatprep.subr.mxu1 %v1615_v27  ;;  %1811 = vmatpush1.msra.mxu0 %v1754_v49  ;;  %v1925_v25 = vsel %vm1404_vm10, %v3710_v51, %v1924_v31  ;;  %v1248_v7 = vmax.f32 %v1152_v57, %v1200_v35  ;;  %v1930_v16 = vsel %vm1400_vm8, %v3684_v13, %v1929_v22  ;;  %v1744_v49 = vld [vmem:[#allocation5 + $0x330] sm:$0xff]  ;;  %v1741_v36 = vld [vmem:[#allocation5 + $0x318] sm:$0xff]  ;;  %v1598_v48 = vld [vmem:[#allocation5 + $0x200] sm:$0xff] }
 0x174   :  { %1671 = vmatpush1.msra.mxu1 %v1614_v40  ;;  %1812 = vmatprep.subr.mxu0 %v1753_v52  ;;  %v1642_v21 = vsel %vm1398_vm7, %v3584_v47, %v1641_v15  ;;  %v3757_v4 = vsel %vm1406_vm11, %v1915_v54, %v1925_v25  ;;  %v1931_v17 = vsel %vm1402_vm9, %v3731_v26, %v1930_v16  ;;  %v1605_v47 = vld [vmem:[#allocation5 + $0x238] sm:$0xff]  ;;  %v1604_v40 = vld [vmem:[#allocation5 + $0x230] sm:$0xff]  ;;  %v1743_v52 = vld [vmem:[#allocation5 + $0x328] sm:$0xff] }
 0x175   :  { %1672 = vmatprep.subr.mxu1 %v1613_v9  ;;  %1813 = vmatpush1.msra.mxu0 %v1752_v10  ;;  %v1788_v5 = vsel %vm1396_vm6, %v3636_v61, %v1787_v43  ;;  %v1919_v6 = vrot.slane %v1248_v7, %v3485_v42  ;;  %v1932_v27 = vsel %vm1404_vm10, %v3739_v59, %v1931_v17  ;;  %v1603_v9 = vld [vmem:[#allocation5 + $0x228] sm:$0xff]  ;;  %v1742_v10 = vld [vmem:[#allocation5 + $0x320] sm:$0xff]  ;;  %v1909_v11 = vld [vmem:[#allocation5 + $0x4f8] sm:$0xff] }
 0x176   :  { %1673 = vmatpush1.msra.mxu1 %v1612_v58  ;;  %1814 = vmatprep.subr.mxu0 %v1751_v39  ;;  %v1648_v28 = vsel %vm1396_vm6, %v3620_v53, %v1647_v56  ;;  %v1783_v62 = vsel %vm1400_vm8, %v3588_v32, %v3714_v3  ;;  %v1643_v15 = vsel %vm1400_vm8, %v3562_v30, %v1642_v21  ;;  %v1602_v43 = vld [vmem:[#allocation5 + $0x220] sm:$0xff]  ;;  %v1601_v58 = vld [vmem:[#allocation5 + $0x218] sm:$0xff]  ;;  %v1740_v39 = vld [vmem:[#allocation5 + $0x310] sm:$0xff] }
 0x177   :  { %1674 = vmatprep.subr.mxu1 %v1611_v1  ;;  %1815 = vmatpush1.msra.mxu0 %v1750_v44  ;;  %v3772_v60 = vsel %vm1406_vm11, %v1919_v6, %v1932_v27  ;;  %v1789_v53 = vsel %vm1398_vm7, %v3666_v14, %v1788_v5  ;;  %v1649_v3 = vsel %vm1398_vm7, %v3636_v61, %v1648_v28  ;;  %v1600_v30 = vld [vmem:[#allocation5 + $0x210] sm:$0xff]  ;;  %v1599_v61 = vld [vmem:[#allocation5 + $0x208] sm:$0xff]  ;;  %v1738_v44 = vld [vmem:[#allocation5 + $0x300] sm:$0xff] }
 0x178   :  { %1675 = vmatpush1.msra.mxu1 %v1610_v37  ;;  %1816 = vmatprep.subr.mxu0 %v1749_v63  ;;  %v1784_v56 = vsel %vm1402_vm9, %v3595_v45, %v1783_v62  ;;  %v1644_v57 = vsel %vm1402_vm9, %v3588_v32, %v1643_v15  ;;  %v1790_v1 = vsel %vm1400_vm8, %v3678_v8, %v1789_v53  ;;  %v1904_v31 = vld [vmem:[#allocation5 + $0x4d0] sm:$0xff]  ;;  %v1898_v7 = vld [vmem:[#allocation5 + $0x4a0] sm:$0xff]  ;;  %v1897_v16 = vld [vmem:[#allocation5 + $0x498] sm:$0xff] }
 0x179   :  { %1676 = vmatprep.subr.mxu1 %v1609_v19  ;;  %1817 = vmatpush1.msra.mxu0 %v1748_v20  ;;  %v1650_v12 = vsel %vm1400_vm8, %v3666_v14, %v1649_v3  ;;  %v1785_v37 = vsel %vm1404_vm10, %v3707_v50, %v1784_v56  ;;  %v1645_v32 = vsel %vm1404_vm10, %v3595_v45, %v1644_v57  ;;  %v1907_v19 = vld [vmem:[#allocation5 + $0x4e8] sm:$0xff]  ;;  %v1900_v25 = vld [vmem:[#allocation5 + $0x4b0] sm:$0xff]  ;;  %v1893_v21 = vld [vmem:[#allocation5 + $0x478] sm:$0xff] }
 0x17a   :  { %1677 = vmatpush1.msra.mxu1 %v1608_v23  ;;  %1818 = vmatprep.subr.mxu0 %v1747_v24  ;;  %v1791_v63 = vsel %vm1402_vm9, %v3684_v13, %v1790_v1  ;;  %v1651_v14 = vsel %vm1402_vm9, %v3678_v8, %v1650_v12  ;;  %v1786_v35 = vsel %vm1406_vm11, %v3710_v51, %v1785_v37  ;;  %v1906_v8 = vld [vmem:[#allocation5 + $0x4e0] sm:$0xff]  ;;  %v1905_v51 = vld [vmem:[#allocation5 + $0x4d8] sm:$0xff]  ;;  %v1903_v23 = vld [vmem:[#allocation5 + $0x4c8] sm:$0xff] }
 0x17b   :  { %1678 = vmatprep.subr.mxu1 %v1607_v18  ;;  %1819 = vmatpush1.msra.mxu0 %v1746_v46  ;;  %v1646_v45 = vsel %vm1406_vm11, %v3707_v50, %v1645_v32  ;;  %v1792_v20 = vsel %vm1404_vm10, %v3731_v26, %v1791_v63  ;;  %v1652_v54 = vsel %vm1404_vm10, %v3684_v13, %v1651_v14  ;;  %v1902_v13 = vld [vmem:[#allocation5 + $0x4c0] sm:$0xff]  ;;  %v1901_v24 = vld [vmem:[#allocation5 + $0x4b8] sm:$0xff]  ;;  %v1895_v18 = vld [vmem:[#allocation5 + $0x488] sm:$0xff] }
 0x17c   :  { %1679 = vmatpush1.msra.mxu1 %v1606_v29  ;;  %1820 = vmatprep.subr.mxu0 %v1745_v34  ;;  %v1793_v50 = vsel %vm1406_vm11, %v3739_v59, %v1792_v20  ;;  %v1653_v22 = vsel %vm1406_vm11, %v3731_v26, %v1652_v54  ;;  %v1899_v59 = vld [vmem:[#allocation5 + $0x4a8] sm:$0xff]  ;;  %v1896_v26 = vld [vmem:[#allocation5 + $0x490] sm:$0xff]  ;;  %v1894_v46 = vld [vmem:[#allocation5 + $0x480] sm:$0xff] }
 0x17d   :  { %1680 = vmatprep.subr.mxu1 %v1605_v47  ;;  %1821 = vmatpush1.msra.mxu0 %v1744_v49  ;;  %v1892_v17 = vld [vmem:[#allocation5 + $0x470] sm:$0xff]  ;;  %v1891_v29 = vld [vmem:[#allocation5 + $0x468] sm:$0xff]  ;;  %v1890_v34 = vld [vmem:[#allocation5 + $0x460] sm:$0xff] }
 0x17e   :  { %1681 = vmatpush1.msra.mxu1 %v1604_v40  ;;  %1822 = vmatprep.subr.mxu0 %v1743_v52  ;;  %v1889_v5 = vld [vmem:[#allocation5 + $0x458] sm:$0xff]  ;;  %v1888_v6 = vld [vmem:[#allocation5 + $0x450] sm:$0xff]  ;;  %v1887_v27 = vld [vmem:[#allocation5 + $0x448] sm:$0xff] }
 0x17f   :  { %1682 = vmatprep.subr.mxu1 %v1603_v9  ;;  %1823 = vmatpush1.msra.mxu0 %v1742_v10  ;;  %v1886_v47 = vld [vmem:[#allocation5 + $0x440] sm:$0xff]  ;;  %v1885_v49 = vld [vmem:[#allocation5 + $0x438] sm:$0xff]  ;;  %v1884_v28 = vld [vmem:[#allocation5 + $0x430] sm:$0xff] }
 0x180   :  { %1683 = vmatpush1.msra.mxu1 %v1602_v43  ;;  %1824 = vmatprep.subr.mxu0 %v1741_v36  ;;  %v1883_v40 = vld [vmem:[#allocation5 + $0x428] sm:$0xff]  ;;  %v1882_v52 = vld [vmem:[#allocation5 + $0x420] sm:$0xff]  ;;  %v1881_v62 = vld [vmem:[#allocation5 + $0x418] sm:$0xff] }
 0x181   :  { %1684 = vmatprep.subr.mxu1 %v1601_v58  ;;  %1825 = vmatpush1.msra.mxu0 %v1740_v39  ;;  %v1880_v9 = vld [vmem:[#allocation5 + $0x410] sm:$0xff]  ;;  %v1879_v10 = vld [vmem:[#allocation5 + $0x408] sm:$0xff]  ;;  %v1878_v15 = vld [vmem:[#allocation5 + $0x400] sm:$0xff] }
 0x182   :  { %1685 = vmatpush1.msra.mxu1 %v1600_v30  ;;  %1826 = vmatprep.subr.mxu0 %v1739_v55  ;;  %v2165_v53 = vld [vmem:[%s4217_s3 + $0x78] sm:$0xff]  ;;  %v2164_v36 = vld [vmem:[%s4217_s3 + $0x70] sm:$0xff]  ;;  %v2824_v3 = vld [vmem:[%s4217_s3 + $0xe8] sm:$0xff] }
 0x183   :  { %1686 = vmatprep.subr.mxu1 %v1599_v61  ;;  %1827 = vmatpush1.msra.mxu0 %v1738_v44  ;;  %v2826_v43 = vld [vmem:[%s4217_s3 + $0xf8] sm:$0xff]  ;;  %v2162_v58 = vld [vmem:[%s4217_s3 + $0x60] sm:$0xff]  ;;  %v2160_v55 = vld [vmem:[%s4217_s3 + $0x50] sm:$0xff] }
 0x184   :  { %1860 = vmatprep.mubr.f32.mxu0 %v3226_v0  ;;  %1687 = vmatpush1.msra.mxu1 %v1598_v48  ;;  %v2823_v39 = vld [vmem:[%s4217_s3 + $0xe0] sm:$0xff]  ;;  %v2161_v56 = vld [vmem:[%s4217_s3 + $0x58] sm:$0xff]  ;;  %v2821_v57 = vld [vmem:[%s4217_s3 + $0xd0] sm:$0xff] }
 0x185   :  { %1720 = vmatprep.mubr.f32.mxu1 %v3226_v0  ;;  %1861 = vmatmul.mubr.f32.vlgmr.msra.gmra.mxu0 %v1786_v35  ;;  %v2822_v30 = vld [vmem:[%s4217_s3 + $0xd8] sm:$0xff]  ;;  %v2159_v1 = vld [vmem:[%s4217_s3 + $0x48] sm:$0xff]  ;;  %v2158_v44 = vld [vmem:[%s4217_s3 + $0x40] sm:$0xff] }
 0x186   :  { %1721 = vmatmul.mubr.f32.vlgmr.msra.gmra.mxu1 %v1646_v45  ;;  %1936 = vmatprep.subr.mxu1 %v1909_v11  ;;  %v2820_v61 = vld [vmem:[%s4217_s3 + $0xc8] sm:$0xff]  ;;  %v2819_v12 = vld [vmem:[%s4217_s3 + $0xc0] sm:$0xff]  ;;  %v2157_v48 = vld [vmem:[%s4217_s3 + $0x38] sm:$0xff] }
 0x187   :  { %1937 = vmatpush1.msra.mxu1 %v1908_v2  ;;  %1866 = vmatprep.mubr.f32.mxu0 %v3226_v0  ;;  %v2818_v37 = vld [vmem:[%s4217_s3 + $0xb8] sm:$0xff]  ;;  %v2156_v32 = vld [vmem:[%s4217_s3 + $0x30] sm:$0xff]  ;;  %v2155_v11 = vld [vmem:[%s4217_s3 + $0x28] sm:$0xff] }
 0x188   :  { %1938 = vmatprep.subr.mxu1 %v1907_v19  ;;  %1726 = vmatprep.mubr.f32.mxu1 %v3226_v0  ;;  %v2817_v63 = vld [vmem:[%s4217_s3 + $0xb0] sm:$0xff]  ;;  %v2816_v14 = vld [vmem:[%s4217_s3 + $0xa8] sm:$0xff]  ;;  %v2154_v35 = vld [vmem:[%s4217_s3 + $0x20] sm:$0xff] }
 0x189   :  { %1867 = vmatmul.mubr.f32.gmra.mxu0 %v1793_v50  ;;  %1939 = vmatpush1.msra.mxu1 %v1906_v8  ;;  %v2815_v2 = vld [vmem:[%s4217_s3 + $0xa0] sm:$0xff]  ;;  %v2153_v45 = vld [vmem:[%s4217_s3 + $0x18] sm:$0xff]  ;;  %v2152_v20 = vld [vmem:[%s4217_s3 + $0x10] sm:$0xff] }
 0x18a   :  { %1727 = vmatmul.mubr.f32.gmra.mxu1 %v1653_v22  ;;  %1940 = vmatprep.subr.mxu1 %v1905_v51  ;;  %v2814_v19 = vld [vmem:[%s4217_s3 + $0x98] sm:$0xff]  ;;  %v2813_v8 = vld [vmem:[%s4217_s3 + $0x90] sm:$0xff]  ;;  %v2151_v54 = vld [vmem:[%s4217_s3 + $0x8] sm:$0xff] }
 0x18b   :  { %1941 = vmatpush1.msra.mxu1 %v1904_v31  ;;  %2000 = vmatprep.mubr.f32.mxu1 %v3226_v0  ;;  %v2812_v51 = vld [vmem:[%s4217_s3 + $0x88] sm:$0xff]  ;;  %v2150_v50 = vld [vmem:[%s4217_s3] sm:$0xff] }
 0x18c   :  { %1942 = vmatprep.subr.mxu1 %v1903_v23  ;;  %2954 = vmatprep.subr.mxu0 %v3226_v0  ;;  %v2811_v31 = vld [vmem:[%s4217_s3 + $0x80] sm:$0xff] }
 0x18d   :  { %1943 = vmatpush1.msra.mxu1 %v1902_v13  ;;  %2955 = vmatpush3.msra.mxu0 %v2826_v43 }
 0x18e   :  { %1944 = vmatprep.subr.mxu1 %v1901_v24  ;;  %2956 = vmatprep.subr.mxu0 %v3226_v0 }
 0x18f   :  { %1945 = vmatpush1.msra.mxu1 %v1900_v25  ;;  %2986 = vmatprep.mubr.msk.f32.mxu0 %vm3228_vm12, %v3226_v0 }
 0x190   :  { %1946 = vmatprep.subr.mxu1 %v1899_v59 }
 0x191   :  { %1947 = vmatpush1.msra.mxu1 %v1898_v7 }
 0x192   :  { %1948 = vmatprep.subr.mxu1 %v1897_v16 }
 0x193   :  { %1949 = vmatpush1.msra.mxu1 %v1896_v26 }
 0x194   :  { %1950 = vmatprep.subr.mxu1 %v1895_v18 }
 0x195   :  { %1951 = vmatpush1.msra.mxu1 %v1894_v46 }
 0x196   :  { %1952 = vmatprep.subr.mxu1 %v1893_v21 }
 0x197   :  { %1953 = vmatpush1.msra.mxu1 %v1892_v17 }
 0x198   :  { %1954 = vmatprep.subr.mxu1 %v1891_v29 }
 0x199   :  { %1955 = vmatpush1.msra.mxu1 %v1890_v34 }
 0x19a   :  { %1956 = vmatprep.subr.mxu1 %v1889_v5 }
 0x19b   :  { %1957 = vmatpush1.msra.mxu1 %v1888_v6  ;;  %v2802_v6 = vld [vmem:[%s4220_s6 + $0x1] ss:$8 sm:$0x3] }
 0x19c   :  { %1958 = vmatprep.subr.mxu1 %v1887_v27 }
 0x19d   :  { %1959 = vmatpush1.msra.mxu1 %v1886_v47 }
 0x19e   :  { %1960 = vmatprep.subr.mxu1 %v1885_v49 }
 0x19f   :  { %1961 = vmatpush1.msra.mxu1 %v1884_v28 }
 0x1a0   :  { %1962 = vmatprep.subr.mxu1 %v1883_v40 }
 0x1a1   :  { %1963 = vmatpush1.msra.mxu1 %v1882_v52 }
 0x1a2   :  { %1964 = vmatprep.subr.mxu1 %v1881_v62  ;;  %v2023_v62 = vrot.slane %v2802_v6, %v3485_v42 }
 0x1a3   :  { %1965 = vmatpush1.msra.mxu1 %v1880_v9 }
 0x1a4   :  { %1966 = vmatprep.subr.mxu1 %v1879_v10 }
 0x1a5   :  { %1967 = vmatpush1.msra.mxu1 %v1878_v15 }
 0x1a6   :  { %2001 = vmatmul.mubr.f32.vlgmr.msra.gmra.mxu1 %v3757_v4  ;;  %2989 = vmatprep.subr.mxu1 %v3226_v0  ;;  %v2825_v4 = vld [vmem:[%s4217_s3 + $0xf0] sm:$0xff] }
 0x1a7   :  { %2006 = vmatprep.mubr.f32.mxu1 %v3226_v0  ;;  %2990 = vmatpush3.msra.mxu1 %v2165_v53 }
 0x1a8   :  { %2991 = vmatprep.subr.mxu1 %v3226_v0  ;;  %2957 = vmatpush3.msra.mxu0 %v2825_v4 }
 0x1a9   :  { %2992 = vmatpush3.msra.mxu1 %v2164_v36  ;;  %2958 = vmatprep.subr.mxu0 %v3226_v0  ;;  %v2027_v36 = vrot.slane %v2802_v6, %v885_v38  ;;  %v2857_v6 = vld [vmem:[%s4217_s3 + $0x1f0] sm:$0xff] }
 0x1aa   :  { %2007 = vmatmul.mubr.f32.gmra.mxu1 %v3772_v60  ;;  %2993 = vmatprep.subr.mxu1 %v3226_v0  ;;  %v2163_v60 = vld [vmem:[%s4217_s3 + $0x68] sm:$0xff] }
 0x1ab   :  { %2994 = vmatpush3.msra.mxu1 %v2163_v60  ;;  %2959 = vmatpush3.msra.mxu0 %v2824_v3 }
 0x1ac   :  { %2995 = vmatprep.subr.mxu1 %v3226_v0  ;;  %2960 = vmatprep.subr.mxu0 %v3226_v0 }
 0x1ad   :  { %2996 = vmatpush3.msra.mxu1 %v2162_v58  ;;  %2961 = vmatpush3.msra.mxu0 %v2823_v39 }
 0x1ae   :  { %2997 = vmatprep.subr.mxu1 %v3226_v0  ;;  %2962 = vmatprep.subr.mxu0 %v3226_v0 }
 0x1af   :  { %2998 = vmatpush3.msra.mxu1 %v2161_v56  ;;  %2963 = vmatpush3.msra.mxu0 %v2822_v30 }
 0x1b0   :  { %2999 = vmatprep.subr.mxu1 %v3226_v0  ;;  %2964 = vmatprep.subr.mxu0 %v3226_v0 }
 0x1b1   :  { %3000 = vmatpush3.msra.mxu1 %v2160_v55  ;;  %2965 = vmatpush3.msra.mxu0 %v2821_v57 }
 0x1b2   :  { %3001 = vmatprep.subr.mxu1 %v3226_v0  ;;  %2966 = vmatprep.subr.mxu0 %v3226_v0 }
 0x1b3   :  { %3002 = vmatpush3.msra.mxu1 %v2159_v1  ;;  %2967 = vmatpush3.msra.mxu0 %v2820_v61 }
 0x1b4   :  { %3003 = vmatprep.subr.mxu1 %v3226_v0  ;;  %2968 = vmatprep.subr.mxu0 %v3226_v0 }
 0x1b5   :  { %3004 = vmatpush3.msra.mxu1 %v2158_v44  ;;  %2969 = vmatpush3.msra.mxu0 %v2819_v12 }
 0x1b6   :  { %3005 = vmatprep.subr.mxu1 %v3226_v0  ;;  %2970 = vmatprep.subr.mxu0 %v3226_v0 }
 0x1b7   :  { %3006 = vmatpush3.msra.mxu1 %v2157_v48  ;;  %2971 = vmatpush3.msra.mxu0 %v2818_v37 }
 0x1b8   :  { %3007 = vmatprep.subr.mxu1 %v3226_v0  ;;  %2972 = vmatprep.subr.mxu0 %v3226_v0 }
 0x1b9   :  { %3008 = vmatpush3.msra.mxu1 %v2156_v32  ;;  %2973 = vmatpush3.msra.mxu0 %v2817_v63 }
 0x1ba   :  { %3009 = vmatprep.subr.mxu1 %v3226_v0  ;;  %2974 = vmatprep.subr.mxu0 %v3226_v0 }
 0x1bb   :  { %3010 = vmatpush3.msra.mxu1 %v2155_v11  ;;  %2975 = vmatpush3.msra.mxu0 %v2816_v14 }
 0x1bc   :  { %3011 = vmatprep.subr.mxu1 %v3226_v0  ;;  %2976 = vmatprep.subr.mxu0 %v3226_v0 }
 0x1bd   :  { %3012 = vmatpush3.msra.mxu1 %v2154_v35  ;;  %2977 = vmatpush3.msra.mxu0 %v2815_v2 }
 0x1be   :  { %3013 = vmatprep.subr.mxu1 %v3226_v0  ;;  %2978 = vmatprep.subr.mxu0 %v3226_v0 }
 0x1bf   :  { %3014 = vmatpush3.msra.mxu1 %v2153_v45  ;;  %2979 = vmatpush3.msra.mxu0 %v2814_v19 }
 0x1c0   :  { %3015 = vmatprep.subr.mxu1 %v3226_v0  ;;  %2980 = vmatprep.subr.mxu0 %v3226_v0 }
 0x1c1   :  { %3016 = vmatpush3.msra.mxu1 %v2152_v20  ;;  %2981 = vmatpush3.msra.mxu0 %v2813_v8 }
 0x1c2   :  { %3017 = vmatprep.subr.mxu1 %v3226_v0  ;;  %2982 = vmatprep.subr.mxu0 %v3226_v0 }
 0x1c3   :  { %3018 = vmatpush3.msra.mxu1 %v2151_v54  ;;  %2983 = vmatpush3.msra.mxu0 %v2812_v51 }
 0x1c4   :  { %3019 = vmatprep.subr.mxu1 %v3226_v0  ;;  %2984 = vmatprep.subr.mxu0 %v3226_v0 }
 0x1c5   :  { %3020 = vmatpush3.msra.mxu1 %v2150_v50  ;;  %3021 = vmatprep.mubr.msk.f32.mxu1 %vm3228_vm12, %v3226_v0 }
 0x1c6   :  { %3059 = vmatprep.subr.mxu1 %v3226_v0  ;;  %2985 = vmatpush3.msra.mxu0 %v2811_v31 }
 0x1c7   :  { %3024 = vmatprep.subr.mxu0 %v3226_v0 }
 0x222   :  { %v1586_v13 = vpop.f32.mrf.mxu0 }
 0x224   :  { %v1483_v22 = vpop.f32.mrf.mxu1  ;;  %v1588_v25 = vpop.f32.mrf.mxu0 }
 0x225   :  { %v1587_v21 = vadd.f32 %v1586_v13, %v1483_v22 }
 0x226   :  { %v1485_v23 = vpop.f32.mrf.mxu1 }
 0x227   :  { %v1589_v29 = vadd.f32 %v1588_v25, %v1485_v23 }
 0x230   :  { %v1592_v7 = vpop.f32.mrf.mxu0 }
 0x231   :  { %v1489_v24 = vpop.f32.mrf.mxu1 }
 0x232   :  { %v1594_v26 = vpop.f32.mrf.mxu0  ;;  %v1593_v27 = vadd.f32 %v1592_v7, %v1489_v24 }
 0x233   :  { %v1491_v59 = vpop.f32.mrf.mxu1 }
 0x234   :  { %v1595_v28 = vadd.f32 %v1594_v26, %v1491_v59 }
 0x245   :  { %v1862_v46 = vpop.f32.mrf.mxu0 }
 0x246   :  { %v1722_v16 = vpop.f32.mrf.mxu1 }
 0x247   :  { %v1733_v34 = vadd.f32 %v1722_v16, %v1587_v21  ;;  %v1864_v5 = vpop.f32.mrf.mxu0 }
 0x248   :  { %v1724_v18 = vpop.f32.mrf.mxu1 }
 0x249   :  { %v1734_v47 = vadd.f32 %v1724_v18, %v1589_v29  ;;  %v1873_v52 = vadd.f32 %v1862_v46, %v1733_v34  ;;  %v1868_v9 = vpop.f32.mrf.mxu0  ;;  %v2858_v46 = vld [vmem:[%s4217_s3 + $0x1f8] sm:$0xff] }
 0x24a   :  { %v1728_v17 = vpop.f32.mrf.mxu1 }
 0x24b   :  { %v1735_v40 = vadd.f32 %v1728_v17, %v1593_v27  ;;  %v1874_v43 = vadd.f32 %v1864_v5, %v1734_v47  ;;  %v1870_v39 = vpop.f32.mrf.mxu0  ;;  %v2842_v5 = vld [vmem:[%s4217_s3 + $0x178] sm:$0xff] }
 0x24c   :  { %v1730_v49 = vpop.f32.mrf.mxu1 }
 0x24d   :  { %v1736_v15 = vadd.f32 %v1730_v49, %v1595_v28  ;;  %v1875_v58 = vadd.f32 %v1868_v9, %v1735_v40  ;;  %v2841_v49 = vld [vmem:[%s4217_s3 + $0x170] sm:$0xff]  ;;  %v2856_v28 = vld [vmem:[%s4217_s3 + $0x1e8] sm:$0xff] }
 0x24f   :  { %v1876_v57 = vadd.f32 %v1870_v39, %v1736_v15  ;;  %v2854_v15 = vld [vmem:[%s4217_s3 + $0x1d8] sm:$0xff]  ;;  %v2851_v39 = vld [vmem:[%s4217_s3 + $0x1c0] sm:$0xff] }
 0x266   :  { %v2002_v10 = vpop.f32.mrf.mxu1 }
 0x267   :  { %v2013_v53 = vadd.f32 %v2002_v10, %v1873_v52  ;;  %v2840_v52 = vld [vmem:[%s4217_s3 + $0x168] sm:$0xff]  ;;  %v2839_v10 = vld [vmem:[%s4217_s3 + $0x160] sm:$0xff] }
 0x268   :  { %v2004_v4 = vpop.f32.mrf.mxu1 }
 0x269   :  { %v2030_v60 = vadd.f32 %v2023_v62, %v2013_v53  ;;  %v2014_v3 = vadd.f32 %v2004_v4, %v1874_v43  ;;  %v2853_v43 = vld [vmem:[%s4217_s3 + $0x1d0] sm:$0xff] }
 0x26a   :  { %v2008_v56 = vpop.f32.mrf.mxu1  ;;  %v2837_v4 = vld [vmem:[%s4217_s3 + $0x150] sm:$0xff] }
 0x26b   :  { %v2031_v30 = vadd.f32 %v2027_v36, %v2014_v3  ;;  %v2015_v55 = vadd.f32 %v2008_v56, %v1875_v58  ;;  %v2034_v61 = vmax.f32 %v2030_v60, 0.0  ;;  %v2852_v60 = vld [vmem:[%s4217_s3 + $0x1c8] sm:$0xff] }
 0x26c   :  { %v2010_v1 = vpop.f32.mrf.mxu1  ;;  %v2836_v58 = vld [vmem:[%s4217_s3 + $0x148] sm:$0xff] }
 0x26d   :  { %v2035_v44 = vmax.f32 %v2031_v30, 0.0  ;;  %v2016_v12 = vadd.f32 %v2010_v1, %v1876_v57  ;;  %v2032_v48 = vadd.f32 %v2023_v62, %v2015_v55  ;;  %v2855_v62 = vld [vmem:[%s4217_s3 + $0x1e0] sm:$0xff]  ;;  %v2850_v57 = vld [vmem:[%s4217_s3 + $0x1b8] sm:$0xff] }
 0x26e   :  { %v2835_v55 = vld [vmem:[%s4217_s3 + $0x140] sm:$0xff] }
 0x26f   :  { %v2042_v37 = vcombine.low %v2034_v61, %v2035_v44  ;;  %v2033_v32 = vadd.f32 %v2027_v36, %v2016_v12  ;;  %v2036_v38 = vmax.f32 %v2032_v48, 0.0  ;;  %v2043_v27 = vcombine.high %v2034_v61, %v2035_v44  ;;  %v2834_v44 = vld [vmem:[%s4217_s3 + $0x138] sm:$0xff]  ;;  %v2849_v12 = vld [vmem:[%s4217_s3 + $0x1b0] sm:$0xff] }
 0x271   :  { %v2050_v63 = vrot.slane %v2042_v37, %v3505_v41  ;;  %v2037_v33 = vmax.f32 %v2033_v32, 0.0  ;;  %v2057_v9 = vrot.slane %v2043_v27, %v3505_v41  ;;  %v2833_v32 = vld [vmem:[%s4217_s3 + $0x130] sm:$0xff]  ;;  %v2559_v27 = vld [vmem:[%s4218_s4 + $0x48] sm:$0xff] }
 0x273   :  { %v2058_v11 = vcombine.high %v2050_v63, %v2050_v63  ;;  %v2803_v14 = vrot.slane %v2050_v63, 9  ;;  %v2060_v35 = vcombine.low %v2036_v38, %v2037_v33  ;;  %v2061_v21 = vcombine.high %v2036_v38, %v2037_v33 }
 0x274   :  { %v2059_v36 = vcombine.high %v2057_v9, %v2057_v9  ;;  %v2805_v1 = vrot.slane %v2057_v9, 9 }
 0x275   :  { %v2804_v2 = vrot.slane %v2058_v11, 9  ;;  %v2110_v45 = vmax.f32 %v2050_v63, %v2803_v14  ;;  %v2068_v19 = vrot.slane %v2060_v35, %v3505_v41  ;;  %v2075_v40 = vrot.slane %v2061_v21, %v3505_v41  ;;  %v2838_v41 = vld [vmem:[%s4217_s3 + $0x158] sm:$0xff]  ;;  %v2848_v63 = vld [vmem:[%s4217_s3 + $0x1a8] sm:$0xff]  ;;  %v2847_v14 = vld [vmem:[%s4217_s3 + $0x1a0] sm:$0xff] }
 0x276   :  { %v2806_v56 = vrot.slane %v2059_v36, 9  ;;  %v2112_v33 = vmax.f32 %v2057_v9, %v2805_v1  ;;  %v2552_v9 = vld [vmem:[%s4218_s4 + $0x10] sm:$0xff] }
 0x277   :  { %v2111_v20 = vmax.f32 %v2058_v11, %v2804_v2  ;;  %v2126_v8 = vrot.slane %v2110_v45, 2  ;;  %v2076_v54 = vcombine.high %v2068_v19, %v2068_v19  ;;  %v2807_v51 = vrot.slane %v2068_v19, 9  ;;  %v2832_v11 = vld [vmem:[%s4217_s3 + $0x128] sm:$0xff] }
 0x278   :  { %v2077_v53 = vcombine.high %v2075_v40, %v2075_v40  ;;  %v2809_v30 = vrot.slane %v2075_v40, 9  ;;  %v2113_v37 = vmax.f32 %v2059_v36, %v2806_v56  ;;  %v2642_v36 = vld [vmem:[%s4219_s5 + $0x20] sm:$0xff] }
 0x279   :  { %v2808_v50 = vrot.slane %v2076_v54, 9  ;;  %v2114_v31 = vmax.f32 %v2068_v19, %v2807_v51  ;;  %v2127_v22 = vrot.slane %v2111_v20, 2  ;;  %v2142_v24 = vmax.f32 %v2110_v45, %v2126_v8  ;;  %v2831_v45 = vld [vmem:[%s4217_s3 + $0x120] sm:$0xff]  ;;  %v2846_v19 = vld [vmem:[%s4217_s3 + $0x198] sm:$0xff]  ;;  %v2845_v51 = vld [vmem:[%s4217_s3 + $0x190] sm:$0xff] }
 0x27a   :  { %v2810_v3 = vrot.slane %v2077_v53, 9  ;;  %v2116_v48 = vmax.f32 %v2075_v40, %v2809_v30  ;;  %v2129_v35 = vrot.slane %v2113_v37, 2  ;;  %v2128_v8 = vrot.slane %v2112_v33, 2  ;;  %v2555_v40 = vld [vmem:[%s4218_s4 + $0x28] sm:$0xff] }
 0x27b   :  { %v2115_v23 = vmax.f32 %v2076_v54, %v2808_v50  ;;  %v2130_v13 = vrot.slane %v2114_v31, 2  ;;  %v2143_v7 = vmax.f32 %v2111_v20, %v2127_v22  ;;  %v2270_v16 = vrot.slane %v2142_v24, %v3485_v42  ;;  %v2830_v54 = vld [vmem:[%s4217_s3 + $0x118] sm:$0xff]  ;;  %v2829_v22 = vld [vmem:[%s4217_s3 + $0x110] sm:$0xff] }
 0x27c   :  { %v2117_v61 = vmax.f32 %v2077_v53, %v2810_v3  ;;  %v2132_v2 = vrot.slane %v2116_v48, 2  ;;  %v2145_v50 = vmax.f32 %v2113_v37, %v2129_v35  ;;  %v2144_v24 = vmax.f32 %v2112_v33, %v2128_v8  ;;  %v2551_v53 = vld [vmem:[%s4218_s4 + $0x8] sm:$0xff]  ;;  %v2638_v33 = vld [vmem:[%s4219_s5] sm:$0xff] }
 0x27d   :  { %v2146_v25 = vmax.f32 %v2114_v31, %v2130_v13  ;;  %v2131_v59 = vrot.slane %v2115_v23, 2  ;;  %v2188_v29 = vrot.slane %v2143_v7, %v3485_v42 }
 0x27e   :  { %v2133_v38 = vrot.slane %v2117_v61, 2  ;;  %v2148_v31 = vmax.f32 %v2116_v48, %v2132_v2  ;;  %v2469_v7 = vrot.slane %v2145_v50, %v3485_v42 }
 0x27f   :  { %v2274_v26 = vrot.slane %v2146_v25, %v3485_v42  ;;  %v2147_v18 = vmax.f32 %v2115_v23, %v2131_v59  ;;  %v2844_v23 = vld [vmem:[%s4217_s3 + $0x188] sm:$0xff]  ;;  %v2843_v59 = vld [vmem:[%s4217_s3 + $0x180] sm:$0xff] }
 0x280   :  { %v2149_v20 = vmax.f32 %v2117_v61, %v2133_v38  ;;  %v2828_v25 = vld [vmem:[%s4217_s3 + $0x108] sm:$0xff]  ;;  %v2547_v61 = vld [vmem:[%s4220_s6 + $0x2] ss:$0 sm:$0xff]  ;;  %v2566_v38 = vld [vmem:[%s4220_s6 + $0x3] ss:$0 sm:$0xff] }
 0x281   :  { %v2275_v17 = vsel %vm1394_vm5, %v2274_v26, %v2270_v16  ;;  %v2192_v34 = vrot.slane %v2147_v18, %v3485_v42  ;;  %v2373_v16 = vrot.slane %v2148_v31, %v3485_v42  ;;  %v2827_v26 = vld [vmem:[%s4217_s3 + $0x100] sm:$0xff] }
 0x282   :  { %3022 = vmatmul.mubr.f32.vlgmr.msra.gmra.mxu1 %v2275_v17  ;;  %v2473_v13 = vrot.slane %v2149_v20, %v3485_v42  ;;  %v2564_v17 = vld [vmem:[%s4218_s4 + $0x70] sm:$0xff] }
 0x283   :  { %3060 = vmatpush3.msra.mxu1 %v2858_v46  ;;  %v2193_v47 = vsel %vm1394_vm5, %v2192_v34, %v2188_v29  ;;  %3091 = vmatprep.mubr.msk.f32.mxu1 %vm3228_vm12, %v3226_v0  ;;  %v2369_v46 = vrot.slane %v2144_v24, %v3485_v42  ;;  %v2565_v42 = vld [vmem:[%s4218_s4 + $0x78] sm:$0xff]  ;;  %v2563_v29 = vld [vmem:[%s4218_s4 + $0x68] sm:$0xff]  ;;  %v2562_v34 = vld [vmem:[%s4218_s4 + $0x60] sm:$0xff] }
 0x284   :  { %3061 = vmatprep.subr.mxu1 %v3226_v0  ;;  %2987 = vmatmul.mubr.f32.vlgmr.msra.gmra.mxu0 %v2193_v47  ;;  %v2474_v18 = vsel %vm1394_vm5, %v2473_v13, %v2469_v7  ;;  %v2558_v47 = vld [vmem:[%s4218_s4 + $0x40] sm:$0xff] }
 0x285   :  { %3025 = vmatpush3.msra.mxu0 %v2842_v5  ;;  %3062 = vmatpush3.msra.mxu1 %v2857_v6  ;;  %v2374_v21 = vsel %vm1394_vm5, %v2373_v16, %v2369_v46  ;;  %v2561_v5 = vld [vmem:[%s4218_s4 + $0x58] sm:$0xff]  ;;  %v2560_v6 = vld [vmem:[%s4218_s4 + $0x50] sm:$0xff] }
 0x286   :  { %3026 = vmatprep.subr.mxu0 %v3226_v0  ;;  %3063 = vmatprep.subr.mxu1 %v3226_v0 }
 0x287   :  { %3027 = vmatpush3.msra.mxu0 %v2841_v49  ;;  %3064 = vmatpush3.msra.mxu1 %v2856_v28  ;;  %v2557_v49 = vld [vmem:[%s4218_s4 + $0x38] sm:$0xff]  ;;  %v2556_v28 = vld [vmem:[%s4218_s4 + $0x30] sm:$0xff] }
 0x288   :  { %3028 = vmatprep.subr.mxu0 %v3226_v0  ;;  %3065 = vmatprep.subr.mxu1 %v3226_v0 }
 0x289   :  { %3029 = vmatpush3.msra.mxu0 %v2840_v52  ;;  %3066 = vmatpush3.msra.mxu1 %v2855_v62  ;;  %v2554_v52 = vld [vmem:[%s4218_s4 + $0x20] sm:$0xff]  ;;  %v2553_v62 = vld [vmem:[%s4218_s4 + $0x18] sm:$0xff] }
 0x28a   :  { %3030 = vmatprep.subr.mxu0 %v3226_v0  ;;  %3067 = vmatprep.subr.mxu1 %v3226_v0 }
 0x28b   :  { %3031 = vmatpush3.msra.mxu0 %v2839_v10  ;;  %3068 = vmatpush3.msra.mxu1 %v2854_v15  ;;  %v2645_v10 = vld [vmem:[%s4219_s5 + $0x38] sm:$0xff]  ;;  %v2644_v15 = vld [vmem:[%s4219_s5 + $0x30] sm:$0xff] }
 0x28c   :  { %3032 = vmatprep.subr.mxu0 %v3226_v0  ;;  %3069 = vmatprep.subr.mxu1 %v3226_v0 }
 0x28d   :  { %3033 = vmatpush3.msra.mxu0 %v2838_v41  ;;  %3070 = vmatpush3.msra.mxu1 %v2853_v43  ;;  %v2643_v41 = vld [vmem:[%s4219_s5 + $0x28] sm:$0xff]  ;;  %v2550_v43 = vld [vmem:[%s4218_s4] sm:$0xff] }
 0x28e   :  { %3034 = vmatprep.subr.mxu0 %v3226_v0  ;;  %3071 = vmatprep.subr.mxu1 %v3226_v0 }
 0x28f   :  { %3035 = vmatpush3.msra.mxu0 %v2837_v4  ;;  %3072 = vmatpush3.msra.mxu1 %v2852_v60  ;;  %v2641_v4 = vld [vmem:[%s4219_s5 + $0x18] sm:$0xff] }
 0x290   :  { %3036 = vmatprep.subr.mxu0 %v3226_v0  ;;  %3073 = vmatprep.subr.mxu1 %v3226_v0 }
 0x291   :  { %3037 = vmatpush3.msra.mxu0 %v2836_v58  ;;  %3074 = vmatpush3.msra.mxu1 %v2851_v39 }
 0x292   :  { %3038 = vmatprep.subr.mxu0 %v3226_v0  ;;  %3075 = vmatprep.subr.mxu1 %v3226_v0 }
 0x293   :  { %3039 = vmatpush3.msra.mxu0 %v2835_v55  ;;  %3076 = vmatpush3.msra.mxu1 %v2850_v57 }
 0x294   :  { %3040 = vmatprep.subr.mxu0 %v3226_v0  ;;  %3077 = vmatprep.subr.mxu1 %v3226_v0 }
 0x295   :  { %3041 = vmatpush3.msra.mxu0 %v2834_v44  ;;  %3078 = vmatpush3.msra.mxu1 %v2849_v12 }
 0x296   :  { %3042 = vmatprep.subr.mxu0 %v3226_v0  ;;  %3079 = vmatprep.subr.mxu1 %v3226_v0 }
 0x297   :  { %3043 = vmatpush3.msra.mxu0 %v2833_v32  ;;  %3080 = vmatpush3.msra.mxu1 %v2848_v63  ;;  %v2640_v32 = vld [vmem:[%s4219_s5 + $0x10] sm:$0xff]  ;;  %v2639_v63 = vld [vmem:[%s4219_s5 + $0x8] sm:$0xff]  ;;  %s2728_s5 = sshll.u32 %s3229_s27, 4  ;;  %s2729_s5 = int_to_ptr.vmem [resolvable:$true] %s2728_s5 }
 0x298   :  { %3044 = vmatprep.subr.mxu0 %v3226_v0  ;;  %3081 = vmatprep.subr.mxu1 %v3226_v0  ;;  %s3196_s3 = scalar_lea.vmem %s2729_s5, 32  ;;  %p3201_p11 = scmp.lt.s32.totalorder %s2729_s5, %s2729_s5 }
 0x299   :  { %3045 = vmatpush3.msra.mxu0 %v2832_v11  ;;  %3082 = vmatpush3.msra.mxu1 %v2847_v14  ;;  %p3197_p10 = scmp.ne.s32.totalorder %s2729_s5, %s3196_s3  ;;  %p3202_p12 = scmp.lt.s32.totalorder %s3196_s3, %s3196_s3 }
 0x29a   :  { %3046 = vmatprep.subr.mxu0 %v3226_v0  ;;  %3083 = vmatprep.subr.mxu1 %v3226_v0 }
 0x29b   :  { %3047 = vmatpush3.msra.mxu0 %v2831_v45  ;;  %3084 = vmatpush3.msra.mxu1 %v2846_v19  ;;  %v2646_v45 = vld [vmem:[%s4220_s6 + $0x4] ss:$0 sm:$0xff]  ;;  %p3203_p13 = por %p3202_p12, %p3201_p11 }
 0x29c   :  { %3048 = vmatprep.subr.mxu0 %v3226_v0  ;;  %3085 = vmatprep.subr.mxu1 %v3226_v0 }
 0x29d   :  { %3049 = vmatpush3.msra.mxu0 %v2830_v54  ;;  %3086 = vmatpush3.msra.mxu1 %v2845_v51  ;;  %p3204_p0 = pnand %p3203_p13, %p3197_p10 }
 0x29e   :  { %3050 = vmatprep.subr.mxu0 %v3226_v0  ;;  %3087 = vmatprep.subr.mxu1 %v3226_v0 }
 0x29f   :  { %3051 = vmatpush3.msra.mxu0 %v2829_v22  ;;  %3088 = vmatpush3.msra.mxu1 %v2844_v23 }
 0x2a0   :  { %3052 = vmatprep.subr.mxu0 %v3226_v0  ;;  %3089 = vmatprep.subr.mxu1 %v3226_v0 }
 0x2a1   :  { %3053 = vmatpush3.msra.mxu0 %v2828_v25  ;;  %3090 = vmatpush3.msra.mxu1 %v2843_v59 }
 0x2a2   :  { %3054 = vmatprep.subr.mxu0 %v3226_v0  ;;  %3092 = vmatmul.mubr.f32.vlgmr.msra.gmra.mxu1 %v2474_v18 }
 0x2a3   :  { %3055 = vmatpush3.msra.mxu0 %v2827_v26  ;;  %3056 = vmatprep.mubr.msk.f32.mxu0 %vm3228_vm12, %v3226_v0 }
 0x2a4   :  { %3057 = vmatmul.mubr.f32.vlgmr.msra.gmra.mxu0 %v2374_v21  ;;  %3094 = vmatprep.subr.mxu0 %v3226_v0 }
 0x2a5   :  { %3126 = vmatprep.mubr.msk.f32.mxu0 %vm3228_vm12, %v3226_v0  ;;  %3129 = vmatprep.subr.mxu1 %v3226_v0 }
 0x2a6   :  { %3145 = vmatprep.mubr.msk.f32.mxu1 %vm3228_vm12, %v3226_v0  ;;  %3095 = vmatpush3.msra.mxu0 %v2565_v42 }
 0x2a7   :  { %3096 = vmatprep.subr.mxu0 %v3226_v0  ;;  %3130 = vmatpush3.msra.mxu1 %v2645_v10 }
 0x2a8   :  { %3097 = vmatpush3.msra.mxu0 %v2564_v17  ;;  %3131 = vmatprep.subr.mxu1 %v3226_v0 }
 0x2a9   :  { %3098 = vmatprep.subr.mxu0 %v3226_v0  ;;  %3132 = vmatpush3.msra.mxu1 %v2644_v15 }
 0x2aa   :  { %3099 = vmatpush3.msra.mxu0 %v2563_v29  ;;  %3133 = vmatprep.subr.mxu1 %v3226_v0 }
 0x2ab   :  { %3100 = vmatprep.subr.mxu0 %v3226_v0  ;;  %3134 = vmatpush3.msra.mxu1 %v2643_v41 }
 0x2ac   :  { %3101 = vmatpush3.msra.mxu0 %v2562_v34  ;;  %3135 = vmatprep.subr.mxu1 %v3226_v0 }
 0x2ad   :  { %3102 = vmatprep.subr.mxu0 %v3226_v0  ;;  %3136 = vmatpush3.msra.mxu1 %v2642_v36 }
 0x2ae   :  { %3103 = vmatpush3.msra.mxu0 %v2561_v5  ;;  %3137 = vmatprep.subr.mxu1 %v3226_v0 }
 0x2af   :  { %3104 = vmatprep.subr.mxu0 %v3226_v0  ;;  %3138 = vmatpush3.msra.mxu1 %v2641_v4 }
 0x2b0   :  { %3105 = vmatpush3.msra.mxu0 %v2560_v6  ;;  %3139 = vmatprep.subr.mxu1 %v3226_v0 }
 0x2b1   :  { %3106 = vmatprep.subr.mxu0 %v3226_v0  ;;  %3140 = vmatpush3.msra.mxu1 %v2640_v32 }
 0x2b2   :  { %3107 = vmatpush3.msra.mxu0 %v2559_v27  ;;  %3141 = vmatprep.subr.mxu1 %v3226_v0 }
 0x2b3   :  { %3108 = vmatprep.subr.mxu0 %v3226_v0  ;;  %3142 = vmatpush3.msra.mxu1 %v2639_v63 }
 0x2b4   :  { %3109 = vmatpush3.msra.mxu0 %v2558_v47  ;;  %3143 = vmatprep.subr.mxu1 %v3226_v0 }
 0x2b5   :  { %3110 = vmatprep.subr.mxu0 %v3226_v0  ;;  %3144 = vmatpush3.msra.mxu1 %v2638_v33 }
 0x2b6   :  { %3111 = vmatpush3.msra.mxu0 %v2557_v49 }
 0x2b7   :  { %3112 = vmatprep.subr.mxu0 %v3226_v0 }
 0x2b8   :  { %3113 = vmatpush3.msra.mxu0 %v2556_v28 }
 0x2b9   :  { %3114 = vmatprep.subr.mxu0 %v3226_v0 }
 0x2ba   :  { %3115 = vmatpush3.msra.mxu0 %v2555_v40 }
 0x2bb   :  { %3116 = vmatprep.subr.mxu0 %v3226_v0 }
 0x2bc   :  { %3117 = vmatpush3.msra.mxu0 %v2554_v52 }
 0x2bd   :  { %3118 = vmatprep.subr.mxu0 %v3226_v0 }
 0x2be   :  { %3119 = vmatpush3.msra.mxu0 %v2553_v62 }
 0x2bf   :  { %3120 = vmatprep.subr.mxu0 %v3226_v0 }
 0x2c0   :  { %3121 = vmatpush3.msra.mxu0 %v2552_v9 }
 0x2c1   :  { %3122 = vmatprep.subr.mxu0 %v3226_v0 }
 0x2c2   :  { %3123 = vmatpush3.msra.mxu0 %v2551_v53 }
 0x2c3   :  { %3124 = vmatprep.subr.mxu0 %v3226_v0 }
 0x2c4   :  { %3125 = vmatpush3.msra.mxu0 %v2550_v43 }
 0x342   :  { %v2343_v60 = vpop.f32.mrf.mxu1 }
 0x344   :  { %v2261_v3 = vpop.f32.mrf.mxu0  ;;  %v3023_v58 = vpop.f32.mrf.mxu1 }
 0x345   :  { %v2344_v30 = vadd.f32 %v2343_v60, %v2261_v3 }
 0x346   :  { %v2988_v39 = vpop.f32.mrf.mxu0 }
 0x362   :  { %v2542_v56 = vpop.f32.mrf.mxu1 }
 0x364   :  { %v2442_v55 = vpop.f32.mrf.mxu0  ;;  %v3093_v57 = vpop.f32.mrf.mxu1 }
 0x365   :  { %v2446_v1 = vadd.f32 %v2442_v55, %v2344_v30 }
 0x366   :  { %v3058_v44 = vpop.f32.mrf.mxu0 }
 0x367   :  { %v2546_v12 = vadd.f32 %v2542_v56, %v2446_v1 }
 0x369   :  { %v2548_v48 = vadd.f32 %v2547_v61, %v2546_v12 }
 0x36b   :  { %v2549_v37 = vmax.f32 %v2548_v48, 0.0 }
 0x36d   :  { %3127 = vmatmul.mubr.f32.vlgmr.msra.gmra.mxu0 %v2549_v37 }
 0x42d   :  { %v2633_v11 = vpop.f32.mrf.mxu0 }
 0x42e   :  { %v2634_v14 = vadd.f32 %v2633_v11, %v2566_v38 }
 0x42f   :  { %v3128_v35 = vpop.f32.mrf.mxu0 }
 0x430   :  { %v2637_v2 = vmax.f32 %v2634_v14, 0.0 }
 0x432   :  { %3146 = vmatmul.mubr.msk.f32.vlgmr.msra.gmra.mxu1 %vm2647_vm13, %v2637_v2 }
 0x4f2   :  { %v2717_v19 = vpop.f32.mrf.mxu1 }
 0x4f3   :  { %v2718_v20 = vadd.f32 %v2717_v19, %v2646_v45 }
 0x4f4   :  { %v3147_v0 = vpop.f32.mrf.mxu1 }
 0x4f5   :  { %2721 = vst [vmem:[#allocation7] sm:$0x3] %v2718_v20 }
 0x4f6   :  { %3207 = shalt.err (!%p3204_p0)
}
 0x4f7   :  { %2731 = dma.vmem_to_hbm [thread:$0]  %s2729_s5, 32, %s4221_s7, [#allocation4]  }
 0x4f8   :  { %3220 = dma.done.wait [#allocation4], 32  }
 0x4f9   :  { %3221 = vsyncadd [#allocation4], 4294967264 }
 0x4fa   :  { %2735 = vsyncpa [#allocation3], 1 }
 0x4fb   :  { %2736 = vsyncpa [#allocation6], 1 }
 0x4fc   :  { %2737 = vsyncpa [#allocation4], 1 }

</bundles_post_ra>
